<compile_context>
chip_gen: v7x
topology: tpu7x:2x2x1
jax: 0.10.0
libtpu: 0.0.40
codegen_flags: <defaults>
</compile_context>

<pallas_src>
import numpy as np

import jax
import jax.numpy as jnp
from jax import lax
from jax.experimental import pallas as pl
from jax.experimental.pallas import tpu as pltpu


# ---------------------------------------------------------------------------
# kernel
# ---------------------------------------------------------------------------
def _time_enc_kernel(t_ref, freq_ref, phase_ref, out_ref):
    """out[r, :] = cos(t[r] * freq + phase) for one row tile.

    t_ref    : (tile//128, 128) lane-dense timestamps; row r lives at [r//128, r%128]
    freq_ref : (1, Dp)  phase_ref : (1, Dp)   (VMEM-resident across grid steps)
    out_ref  : (tile, Dp)
    """
    freq = freq_ref[...]          # (1, Dp)
    phase = phase_ref[...]        # (1, Dp)

    # One-hot (128,128) mask, built once per step: used to move 128 lane-resident
    # timestamps into a (128, 1) sublane column exactly (select + lane reduction).
    sub = lax.broadcasted_iota(jnp.int32, (128, 128), 0)
    lane = lax.broadcasted_iota(jnp.int32, (128, 128), 1)
    onehot = sub == lane

    # Static unroll over 128-row chunks (<= 16 chunks per tile).
    for i in range(t_ref.shape[0]):
        row = t_ref[i:i + 1, :]                                   # (1, 128) lane-dense
        # Exact lane -> sublane relayout: col[j] = row[0, j] (zeros add exactly).
        col = jnp.sum(jnp.where(onehot, row, 0.0), axis=1, keepdims=True)  # (128, 1)
        out_ref[i * 128:(i + 1) * 128, :] = jnp.cos(col * freq + phase)


# ---------------------------------------------------------------------------
# wrapper
# ---------------------------------------------------------------------------
def _round_up(x, m):
    return (x + m - 1) // m * m


def _cdiv(a, b):
    return (a + b - 1) // b


def _choose_tile(R, Dp, requested=None):
    """Pick a row tile: big enough to amortize per-step overhead, small enough to
    fit the VMEM budget on every chip (incl. v7x 64 MiB) and to keep >= 2 grid steps
    on large problems.  Multi-block tiles must be a multiple of 1024 so the
    lane-dense (tile//128, 128) timestamp block keeps its sublane dim a multiple
    of 8; a single block equal to the full array is exempt from that rule."""
    R = max(int(R), 1)
    if requested is None:
        tile = 2048 if R > 8192 else 1024
        # keep the double-buffered f32 output tile around <= 8 MiB of VMEM
        while tile > 1024 and 2 * tile * Dp * 4 > (8 << 20):
            tile //= 2
    else:
        tile = max(128, _round_up(int(requested), 128))
    if tile >= R:
        return _round_up(R, 128)                 # single block (grid == 1)
    return max(1024, _round_up(tile, 1024))      # multi-block


def time_encoding(timestamps, freq, phase, ref_time=None, *, row_tile=None):
    """Pallas forward of TimeEncodingLayer.

    timestamps: any shape [...].  freq/phase: [time_dim].
    Returns [..., time_dim] float32 = cos(t * freq + phase).
    """
    timestamps = jnp.asarray(timestamps, jnp.float32)
    orig_shape = timestamps.shape
    D = int(freq.shape[-1])

    # Fold the relative-time subtraction into the wrapper (mirrors torch's
    # unsqueeze(-1) + broadcast); removes the second narrow per-row stream and
    # the extra kernel variant.
    if ref_time is not None:
        rt = jnp.asarray(ref_time, jnp.float32)
        if rt.ndim < timestamps.ndim:
            rt = rt[..., None]
        timestamps = timestamps - rt

    R = int(np.prod(orig_shape))                 # np.prod(()) == 1 handles scalars
    if R == 0:
        return jnp.zeros(orig_shape + (D,), jnp.float32)

    # Lane-dense frequency/phase; pad to a multiple of 128 lanes if needed so the
    # output store path stays unmasked (padded columns are sliced off lazily).
    Dp = _round_up(D, 128)
    freq2 = jnp.asarray(freq, jnp.float32).reshape(1, D)
    phase2 = jnp.asarray(phase, jnp.float32).reshape(1, D)
    if Dp != D:
        freq2 = jnp.pad(freq2, ((0, 0), (0, Dp - D)))
        phase2 = jnp.pad(phase2, ((0, 0), (0, Dp - D)))

    tile = _choose_tile(R, Dp, row_tile)
    nb = _cdiv(R, tile)
    Rpad = nb * tile

    # Only the tiny timestamp stream is padded (<= tile-1 floats); the output is
    # written at its exact (R, Dp) shape with the ragged last block masked.
    t_flat = timestamps.reshape(R)
    if Rpad != R:
        t_flat = jnp.pad(t_flat, (0, Rpad - R))
    t_dense = t_flat.reshape(Rpad // 128, 128)   # lane-dense timestamp slab

    # VMEM footprint (double-buffered out tile + t tile + params) and a safe,
    # cross-chip scoped-VMEM limit (>= default 32 MiB, <= 48 MiB < v7x's 64 MiB).
    need = 2 * (tile * Dp * 4 + tile * 4) + 2 * 8 * Dp * 4 + (2 << 20)
    vmem_limit = int(min(48 << 20, max(32 << 20, need)))

    out = pl.pallas_call(
        _time_enc_kernel,
        out_shape=jax.ShapeDtypeStruct((R, Dp), jnp.float32),
        grid=(nb,),
        in_specs=[
            pl.BlockSpec((tile // 128, 128), lambda i: (i, 0)),   # lane-dense t tiles
            pl.BlockSpec((1, Dp), lambda i: (0, 0)),              # VMEM-resident freq
            pl.BlockSpec((1, Dp), lambda i: (0, 0)),              # VMEM-resident phase
        ],
        out_specs=pl.BlockSpec((tile, Dp), lambda i: (i, 0)),     # lane-dense store
        compiler_params=pltpu.CompilerParams(
            dimension_semantics=("parallel",),                    # 2-TC sharding on v7x
            vmem_limit_bytes=vmem_limit,
        ),
    )(t_dense, freq2, phase2)

    if Dp != D:
        out = out[:, :D]     # only when time_dim isn't 128-aligned
    return out.reshape(orig_shape + (D,))


# ---------------------------------------------------------------------------
# parameter prep (hoisted out of the hot path, done once per model)
# ---------------------------------------------------------------------------
def make_trainable_params(key, time_dim):
    """trainable=True: xavier_uniform basis_freq (from a [time_dim,1] tensor), zero phase."""
    bound = float(np.sqrt(6.0 / (time_dim + 1)))
    basis_freq = jax.random.uniform(key, (time_dim,), jnp.float32, -bound, bound)
    phase = jnp.zeros((time_dim,), jnp.float32)
    return basis_freq, phase


def make_fixed_params(time_dim, time_scale=1.0):
    """trainable=False: logspace freq_list; fold [cos||sin] into cos(t*f+p)."""
    assert time_dim % 2 == 0, "fixed (non-trainable) basis needs an even time_dim"
    half = time_dim // 2
    freq_list = (jnp.logspace(0.0, 4.0, half, dtype=jnp.float32)
                 * jnp.float32(time_scale))
    freq = jnp.concatenate([freq_list, freq_list])
    phase = jnp.concatenate([jnp.zeros((half,), jnp.float32),
                             jnp.full((half,), -np.pi / 2.0, jnp.float32)])
    return freq, phase, freq_list


# ---------------------------------------------------------------------------
# pure-JAX reference mirroring the PyTorch forward
# ---------------------------------------------------------------------------
def time_encoding_reference(timestamps, *, basis_freq=None, phase=None,
                            freq_list=None, ref_time=None):
    timestamps = jnp.asarray(timestamps, jnp.float32)
    if ref_time is not None:
        rt = jnp.asarray(ref_time, jnp.float32)
        if rt.ndim < timestamps.ndim:
            rt = rt[..., None]
        timestamps = timestamps - rt
    t = timestamps[..., None]
    if basis_freq is not None:                      # trainable path
        return jnp.cos(t * basis_freq + phase)
    cos_terms = jnp.cos(t * freq_list)              # fixed path
    sin_terms = jnp.sin(t * freq_list)
    return jnp.concatenate([cos_terms, sin_terms], axis=-1)


# ---------------------------------------------------------------------------
if __name__ == "__main__":
    key = jax.random.PRNGKey(0)
    k1, k2, k3, k4, k5 = jax.random.split(key, 5)

    # --- config 1: trainable basis, relative ref_time (default constructor) ---
    B, N, time_dim = 4, 32, 128
    timestamps = jax.random.normal(k1, (B, N), jnp.float32) * 2.0
    ref_time = jax.random.normal(k2, (B,), jnp.float32)
    basis_freq, phase = make_trainable_params(k3, time_dim)

    out1 = jax.block_until_ready(
        time_encoding(timestamps, basis_freq, phase, ref_time=ref_time))
    ref1 = time_encoding_reference(timestamps, basis_freq=basis_freq,
                                   phase=phase, ref_time=ref_time)
    np.testing.assert_allclose(np.asarray(out1), np.asarray(ref1),
                               atol=1e-4, rtol=1e-4)

    # --- config 2: fixed (non-trainable) cos||sin basis ---
    time_dim2, time_scale = 128, 1e-3
    freq_f, phase_f, freq_list = make_fixed_params(time_dim2, time_scale)
    timestamps2 = jax.random.uniform(k4, (8, 16), jnp.float32)

    out2 = jax.block_until_ready(time_encoding(timestamps2, freq_f, phase_f))
    ref2 = time_encoding_reference(timestamps2, freq_list=freq_list)
    np.testing.assert_allclose(np.asarray(out2), np.asarray(ref2),
                               atol=1e-4, rtol=1e-4)

    # --- config 3: multi-block grid with a ragged (masked) last output block ---
    timestamps3 = jax.random.uniform(k5, (2500,), jnp.float32) * 2.0
    out3 = jax.block_until_ready(
        time_encoding(timestamps3, basis_freq, phase))          # grid=(3,), ragged
    ref3 = time_encoding_reference(timestamps3, basis_freq=basis_freq, phase=phase)
    np.testing.assert_allclose(np.asarray(out3), np.asarray(ref3),
                               atol=1e-4, rtol=1e-4)

    print("KERNEL_OK")
</pallas_src>

<mosaic_0001>
module attributes {stable_mosaic.version = 11 : i64} {
  func.func @_time_enc_kernel(%arg0: i32, %arg1: memref<1x128xf32, #tpu.memory_space<vmem>>, %arg2: memref<1x128xf32, #tpu.memory_space<vmem>>, %arg3: memref<1x128xf32, #tpu.memory_space<vmem>>, %arg4: memref<128x128xf32, #tpu.memory_space<vmem>>) attributes {dimension_semantics = [#tpu.dimension_semantics<parallel>], iteration_bounds = array<i64: 1>, scalar_prefetch = 0 : i64, scratch_operands = 0 : i64, tpu.core_type = #tpu.core_type<tc>, window_params = [{transform_indices = @transform_0, window_bounds = array<i64: 1, 128>}, {pipeline_mode = #tpu.pipeline_mode<synchronous>, transform_indices = @transform_1, window_bounds = array<i64: 1, 128>}, {pipeline_mode = #tpu.pipeline_mode<synchronous>, transform_indices = @transform_2, window_bounds = array<i64: 1, 128>}, {transform_indices = @transform_3, window_bounds = array<i64: 128, 128>}]} {
    %c0 = arith.constant 0 : index
    %c0_0 = arith.constant 0 : index
    %0 = vector.load %arg2[%c0, %c0_0] : memref<1x128xf32, #tpu.memory_space<vmem>>, vector<1x128xf32>
    %c0_1 = arith.constant 0 : index
    %c0_2 = arith.constant 0 : index
    %1 = vector.load %arg3[%c0_1, %c0_2] : memref<1x128xf32, #tpu.memory_space<vmem>>, vector<1x128xf32>
    %2 = tpu.iota {dimensions = array<i32: 0>} : vector<128x128xi32>
    %3 = tpu.iota {dimensions = array<i32: 1>} : vector<128x128xi32>
    %4 = arith.cmpi eq, %2, %3 : vector<128x128xi32>
    %c0_3 = arith.constant 0 : index
    %c0_4 = arith.constant 0 : index
    %5 = vector.load %arg1[%c0_3, %c0_4] : memref<1x128xf32, #tpu.memory_space<vmem>>, vector<1x128xf32>
    %cst = arith.constant 0.000000e+00 : f32
    %6 = vector.shape_cast %5 : vector<1x128xf32> to vector<1x128xf32>
    %7 = vector.broadcast %6 : vector<1x128xf32> to vector<128x128xf32>
    %8 = vector.broadcast %cst : f32 to vector<128x128xf32>
    %9 = arith.select %4, %7, %8 : vector<128x128xi1>, vector<128x128xf32>
    %cst_5 = arith.constant dense<0.000000e+00> : vector<128xf32>
    %10 = vector.multi_reduction <add>, %9, %cst_5 [1] : vector<128x128xf32> to vector<128xf32>
    %11 = vector.shape_cast %10 : vector<128xf32> to vector<128x1xf32>
    %12 = vector.broadcast %11 : vector<128x1xf32> to vector<128x128xf32>
    %13 = vector.broadcast %0 : vector<1x128xf32> to vector<128x128xf32>
    %14 = arith.mulf %12, %13 : vector<128x128xf32>
    %15 = vector.broadcast %1 : vector<1x128xf32> to vector<128x128xf32>
    %16 = arith.addf %14, %15 : vector<128x128xf32>
    %17 = math.cos %16 : vector<128x128xf32>
    %c0_6 = arith.constant 0 : index
    %c0_7 = arith.constant 0 : index
    %18 = vector.load %arg4[%c0_6, %c0_7] : memref<128x128xf32, #tpu.memory_space<vmem>>, vector<128x128xf32>
    tpu.vector_store %arg4[%c0_6, %c0_7], %17 {strides = array<i32>} : memref<128x128xf32, #tpu.memory_space<vmem>>, vector<128x128xf32>,
    return
  }
  func.func @transform_0(%arg0: i32) -> (i32, i32) {
    %c0_i32 = arith.constant 0 : i32
    %c0_i32_0 = arith.constant 0 : i32
    return %arg0, %c0_i32 : i32, i32
  }
  func.func @transform_1(%arg0: i32) -> (i32, i32) {
    %c0_i32 = arith.constant 0 : i32
    %c0_i32_0 = arith.constant 0 : i32
    %c0_i32_1 = arith.constant 0 : i32
    return %c0_i32, %c0_i32_0 : i32, i32
  }
  func.func @transform_2(%arg0: i32) -> (i32, i32) {
    %c0_i32 = arith.constant 0 : i32
    %c0_i32_0 = arith.constant 0 : i32
    %c0_i32_1 = arith.constant 0 : i32
    return %c0_i32, %c0_i32_0 : i32, i32
  }
  func.func @transform_3(%arg0: i32) -> (i32, i32) {
    %c0_i32 = arith.constant 0 : i32
    %c0_i32_0 = arith.constant 0 : i32
    return %arg0, %c0_i32 : i32, i32
  }
}

</mosaic_0001>

<bundles_post_ra>
// kernel: tpu_custom_call.1
= control target key start
LH: loop header
LB: loop body
LE: loop exit
PB: predicated region body
PF: predicated region fallthrough
CT: control target
= control target key end

     0   :  { %8 = vsyncpa [#allocation3], 0  ;;  %s3419_s0 = inlined_call_operand.hbm [shape: f32[1,128], index: 0, kind: input, shape index: {}]   ;;  %s3420_s1 = inlined_call_operand.vmem [shape: f32[1,128], index: 1, kind: input, shape index: {}]   ;;  %s3421_s2 = inlined_call_operand.vmem [shape: f32[1,128], index: 2, kind: input, shape index: {}]   ;;  %s3422_s3 = inlined_call_operand.hbm [shape: f32[128,128], index: 3, kind: output, shape index: {}]  }
   0x1   :  { %9 = vsyncpa [#allocation4], 0  ;;  %s2101_s12 = smov [#allocation2]   ;;  %s2053_s16 = scalar_lea.hbm %s3419_s0, 16 }
   0x2   :  { %s16_s13 = sshll.u32 %s2101_s12, 4  ;;  %p2054_p0 = scmp.ne.s32.totalorder %s3419_s0, %s2053_s16  ;;  %s17_s13 = int_to_ptr.vmem [resolvable:$true] %s16_s13 }
   0x3   :  { %p2057_p1 = scmp.lt.u32.totalorder %s2053_s16, %s3419_s0 }
   0x5   :  { %p2059_p2 = pnand %p2057_p1, %p2054_p0 }
   0x7   :  { %2062 = shalt.err (!%p2059_p2)
}
   0x8   :  { %s2063_s21 = scalar_lea.vmem %s17_s13, 16  ;;  %s2067_s22 = scalar_lea.vmem %s17_s13, 32 }
   0x9   :  { %p2064_p3 = scmp.ne.s32.totalorder %s17_s13, %s2063_s21  ;;  %p2068_p4 = scmp.lt.s32.totalorder %s17_s13, %s17_s13 }
   0xa   :  { %p2069_p5 = scmp.lt.s32.totalorder %s2067_s22, %s2063_s21 }
   0xc   :  { %p2070_p6 = por %p2069_p5, %p2068_p4 }
   0xe   :  { %p2071_p7 = pnand %p2070_p6, %p2064_p3 }
  0x10   :  { %2074 = shalt.err (!%p2071_p7)
}
  0x11   :  { %19 = dma.hbm_to_vmem [thread:$0]  %s3419_s0, 16, %s17_s13, [#allocation3]  }
  0x12   :  { %2097 = dma.done.wait [#allocation3], 16  }
  0x13   :  { %2098 = vsyncadd [#allocation3], 4294967280  ;;  %v29_v0 = vlaneseq  ;;  %v1844_v6 = vld [vmem:[#allocation2] ss:$0 sm:$0xff] }
  0x14   :  { %v2164_v35 = vld [vmem:[%s3420_s1] ss:$0 sm:$0xff] }
  0x15   :  { %v30_v1 = vshrl.u32 %v29_v0, 7  ;;  %v2143_v2 = vand.u32 127, %v29_v0  ;;  %v2169_v37 = vld [vmem:[%s3421_s2] ss:$0 sm:$0xff] }
  0x17   :  { %v32_v3 = vadd.s32 16, %v30_v1  ;;  %v33_v4 = vadd.s32 24, %v30_v1  ;;  %v31_v5 = vadd.s32 8, %v30_v1  ;;  %vm48_vm0 = vcmp.eq.s32.totalorder %v30_v1, %v2143_v2 }
  0x18   :  { %v35_v7 = vadd.s32 40, %v30_v1  ;;  %v34_v8 = vadd.s32 32, %v30_v1  ;;  %v71_v10 = vsel %vm48_vm0, %v1844_v6, 0.0  ;;  %v37_v13 = vadd.s32 56, %v30_v1 }
  0x19   :  { %vm50_vm1 = vcmp.eq.s32.totalorder %v32_v3, %v2143_v2  ;;  %vm51_vm2 = vcmp.eq.s32.totalorder %v33_v4, %v2143_v2  ;;  %vm49_vm3 = vcmp.eq.s32.totalorder %v31_v5, %v2143_v2  ;;  %87 = vadd.xlane.f32.xlu0 %v71_v10  ;;  %v36_v14 = vadd.s32 48, %v30_v1 }
  0x1a   :  { %v73_v9 = vsel %vm50_vm1, %v1844_v6, 0.0  ;;  %v74_v11 = vsel %vm51_vm2, %v1844_v6, 0.0  ;;  %v72_v12 = vsel %vm49_vm3, %v1844_v6, 0.0  ;;  %vm53_vm4 = vcmp.eq.s32.totalorder %v35_v7, %v2143_v2 }
  0x1b   :  { %91 = vadd.xlane.f32.xlu1 %v73_v9  ;;  %vm52_vm5 = vcmp.eq.s32.totalorder %v34_v8, %v2143_v2  ;;  %v76_v15 = vsel %vm53_vm4, %v1844_v6, 0.0  ;;  %vm55_vm6 = vcmp.eq.s32.totalorder %v37_v13, %v2143_v2  ;;  %vm54_vm7 = vcmp.eq.s32.totalorder %v36_v14, %v2143_v2 }
  0x1c   :  { %v75_v16 = vsel %vm52_vm5, %v1844_v6, 0.0  ;;  %v39_v17 = vadd.s32 72, %v30_v1  ;;  %v38_v18 = vadd.s32 64, %v30_v1  ;;  %v78_v19 = vsel %vm55_vm6, %v1844_v6, 0.0 }
  0x1d   :  { %89 = vadd.xlane.f32.xlu0 %v72_v12  ;;  %v77_v20 = vsel %vm54_vm7, %v1844_v6, 0.0  ;;  %v41_v21 = vadd.s32 88, %v30_v1  ;;  %v40_v22 = vadd.s32 80, %v30_v1  ;;  %v43_v25 = vadd.s32 104, %v30_v1 }
  0x1e   :  { %vm57_vm8 = vcmp.eq.s32.totalorder %v39_v17, %v2143_v2  ;;  %vm56_vm9 = vcmp.eq.s32.totalorder %v38_v18, %v2143_v2  ;;  %v42_v26 = vadd.s32 96, %v30_v1  ;;  %v45_v29 = vadd.s32 120, %v30_v1 }
  0x1f   :  { %93 = vadd.xlane.f32.xlu1 %v74_v11  ;;  %v80_v23 = vsel %vm57_vm8, %v1844_v6, 0.0  ;;  %v79_v24 = vsel %vm56_vm9, %v1844_v6, 0.0  ;;  %vm59_vm10 = vcmp.eq.s32.totalorder %v41_v21, %v2143_v2  ;;  %vm58_vm11 = vcmp.eq.s32.totalorder %v40_v22, %v2143_v2 }
  0x20   :  { %v82_v27 = vsel %vm59_vm10, %v1844_v6, 0.0  ;;  %v81_v28 = vsel %vm58_vm11, %v1844_v6, 0.0  ;;  %vm61_vm12 = vcmp.eq.s32.totalorder %v43_v25, %v2143_v2  ;;  %vm60_vm13 = vcmp.eq.s32.totalorder %v42_v26, %v2143_v2 }
  0x21   :  { %95 = vadd.xlane.f32.xlu0 %v75_v16  ;;  %v44_v30 = vadd.s32 112, %v30_v1  ;;  %v84_v31 = vsel %vm61_vm12, %v1844_v6, 0.0  ;;  %v83_v32 = vsel %vm60_vm13, %v1844_v6, 0.0  ;;  %vm63_vm14 = vcmp.eq.s32.totalorder %v45_v29, %v2143_v2 }
  0x22   :  { %v86_v33 = vsel %vm63_vm14, %v1844_v6, 0.0  ;;  %v2102_v9 = vmov 683565275   ;;  %v2103_v13 = vmov 2475754826  }
  0x23   :  { %97 = vadd.xlane.f32.xlu1 %v76_v15  ;;  %vm62_vm15 = vcmp.eq.s32.totalorder %v44_v30, %v2143_v2  ;;  %v2104_v15 = vmov 2131351028   ;;  %v2105_v17 = vmov 2102212464   ;;  %v2107_v26 = vmov 1326507024  }
  0x24   :  { %v85_v34 = vsel %vm62_vm15, %v1844_v6, 0.0 }
  0x25   :  { %99 = vadd.xlane.f32.xlu0 %v77_v20 }
  0x27   :  { %101 = vadd.xlane.f32.xlu1 %v78_v19  ;;  %v2106_v19 = vmov 920167782  }
  0x29   :  { %103 = vadd.xlane.f32.xlu0 %v79_v24 }
  0x2b   :  { %105 = vadd.xlane.f32.xlu1 %v80_v23 }
  0x2d   :  { %107 = vadd.xlane.f32.xlu0 %v81_v28 }
  0x2f   :  { %109 = vadd.xlane.f32.xlu1 %v82_v27 }
  0x31   :  { %111 = vadd.xlane.f32.xlu0 %v83_v32 }
  0x33   :  { %113 = vadd.xlane.f32.xlu1 %v84_v31 }
  0x35   :  { %115 = vadd.xlane.f32.xlu0 %v85_v34 }
  0x37   :  { %117 = vadd.xlane.f32.xlu1 %v86_v33 }
  0xa6   :  { %v88_v38 = vpop.xlane.xlu0 %87 }
  0xa7   :  { %v125_v40 = vmul.f32 %v2164_v35, %v88_v38 }
  0xa8   :  { %v92_v36 = vpop.xlane.xlu1 %91 }
  0xa9   :  { %v127_v39 = vmul.f32 %v2164_v35, %v92_v36  ;;  %v2177_v42 = vadd.f32 %v2169_v37, %v125_v40 }
  0xaa   :  { %v90_v61 = vpop.xlane.xlu0 %89 }
  0xab   :  { %v2174_v41 = vadd.f32 %v2169_v37, %v127_v39  ;;  %v163_v46 = vand.u32 2147483647, %v2177_v42  ;;  %v166_v47 = vand.u32 2139095040, %v2177_v42  ;;  %v2193_v3 = vmul.f32 %v2164_v35, %v90_v61 }
  0xac   :  { %v94_v43 = vpop.xlane.xlu1 %93 }
  0xad   :  { %v369_v44 = vand.u32 2147483647, %v2174_v41  ;;  %v372_v45 = vand.u32 2139095040, %v2174_v41  ;;  %v128_v49 = vmul.f32 %v2164_v35, %v94_v43  ;;  %v167_v51 = vshrl.u32 %v166_v47, 23 }
  0xae   :  { %v170_v52 = vand.u32 8388607, %v163_v46  ;;  %vm371_vm14 = vcmp.lt.s32.totalorder %v2174_v41, 0 }
  0xaf   :  { %v373_v48 = vshrl.u32 %v372_v45, 23  ;;  %v376_v50 = vand.u32 8388607, %v369_v44  ;;  %v2189_v54 = vadd.f32 %v2169_v37, %v128_v49  ;;  %v1847_v55 = vadd.s32 4294967169, %v167_v51 }
  0xb0   :  { %v171_v58 = vor.u32 8388608, %v170_v52 }
  0xb1   :  { %v1855_v53 = vadd.s32 4294967169, %v373_v48  ;;  %v377_v57 = vor.u32 8388608, %v376_v50  ;;  %v173_v59 = vadd.s32 1, %v1847_v55  ;;  %v475_v60 = vand.u32 2139095040, %v2189_v54 }
  0xb2   :  { %v2199_v6 = vshll.u32 %v171_v58, 8  ;;  %v472_v7 = vand.u32 2147483647, %v2189_v54 }
  0xb3   :  { %v379_v56 = vadd.s32 1, %v1855_v53  ;;  %vm174_vm1 = vcmp.gt.s32.totalorder %v173_v59, 0  ;;  %v476_v63 = vshrl.u32 %v475_v60, 23  ;;  %v2195_v4 = vshll.u32 %v377_v57, 8 }
  0xb4   :  { %v175_v2 = vsel %vm174_vm1, %v173_v59, 0 }
  0xb5   :  { %vm380_vm0 = vcmp.gt.s32.totalorder %v379_v56, 0  ;;  %v2197_v5 = vshrl.u32 %v175_v2, 5  ;;  %v177_v11 = vand.u32 31, %v175_v2  ;;  %v2203_v12 = vadd.s32 4294967169, %v476_v63 }
  0xb6   :  { %v381_v62 = vsel %vm380_vm0, %v379_v56, 0 }
  0xb7   :  { %v382_v0 = vshrl.u32 %v381_v62, 5  ;;  %v383_v1 = vand.u32 31, %v381_v62  ;;  %v178_v31 = vsub.s32 32, %v177_v11  ;;  %v180_v47 = vshll.u32 %v2102_v9, %v177_v11 }
  0xb8   :  { %v183_v51 = vshll.u32 %v2103_v13, %v177_v11  ;;  %v186_v63 = vshll.u32 %v2104_v15, %v177_v11  ;;  %vm195_vm6 = vcmp.lt.s32.totalorder %v2197_v5, 1  ;;  %vm196_vm8 = vcmp.lt.s32.totalorder %v2197_v5, 2 }
  0xb9   :  { %v384_v8 = vsub.s32 32, %v383_v1  ;;  %v386_v10 = vshll.u32 %v2102_v9, %v383_v1  ;;  %v389_v14 = vshll.u32 %v2103_v13, %v383_v1  ;;  %v392_v16 = vshll.u32 %v2104_v15, %v383_v1 }
  0xba   :  { %v395_v18 = vshll.u32 %v2105_v17, %v383_v1  ;;  %v398_v20 = vshll.u32 %v2106_v19, %v383_v1  ;;  %vm401_vm2 = vcmp.lt.s32.totalorder %v382_v0, 1  ;;  %vm402_vm3 = vcmp.lt.s32.totalorder %v382_v0, 2 }
  0xbb   :  { %v387_v21 = vshrl.u32 %v2103_v13, %v384_v8  ;;  %v390_v22 = vshrl.u32 %v2104_v15, %v384_v8  ;;  %v393_v23 = vshrl.u32 %v2105_v17, %v384_v8  ;;  %v385_v24 = vshrl.u32 %v2102_v9, %v384_v8 }
  0xbc   :  { %v396_v25 = vshrl.u32 %v2106_v19, %v384_v8  ;;  %v399_v27 = vshrl.u32 %v2107_v26, %v384_v8  ;;  %vm403_vm4 = vcmp.lt.s32.totalorder %v382_v0, 3  ;;  %vm404_vm5 = vcmp.lt.s32.totalorder %v382_v0, 4 }
  0xbd   :  { %v388_v28 = vor.u32 %v387_v21, %v386_v10  ;;  %v391_v29 = vor.u32 %v390_v22, %v389_v14  ;;  %v394_v30 = vor.u32 %v393_v23, %v392_v16  ;;  %v181_v50 = vshrl.u32 %v2103_v13, %v178_v31 }
  0xbe   :  { %v397_v32 = vor.u32 %v396_v25, %v395_v18  ;;  %v400_v33 = vor.u32 %v399_v27, %v398_v20  ;;  %v184_v56 = vshrl.u32 %v2104_v15, %v178_v31  ;;  %v187_v1 = vshrl.u32 %v2105_v17, %v178_v31 }
  0xbf   :  { %v405_v34 = vsel %vm401_vm2, %v385_v24, %v388_v28  ;;  %v406_v36 = vsel %vm404_vm5, %v394_v30, 2102212464  ;;  %v409_v38 = vsel %vm401_vm2, %v388_v28, %v391_v29  ;;  %v413_v39 = vsel %vm401_vm2, %v391_v29, %v394_v30 }
  0xc0   :  { %v407_v40 = vsel %vm403_vm4, %v391_v29, %v406_v36  ;;  %v410_v43 = vsel %vm404_vm5, %v397_v32, 920167782  ;;  %v414_v45 = vsel %vm404_vm5, %v400_v33, 1326507024  ;;  %v182_v61 = vor.u32 %v181_v50, %v180_v47 }
  0xc1   :  { %v411_v48 = vsel %vm403_vm4, %v394_v30, %v410_v43  ;;  %v415_v49 = vsel %vm403_vm4, %v397_v32, %v414_v45  ;;  %v408_v52 = vsel %vm402_vm3, %v405_v34, %v407_v40  ;;  %v185_v62 = vor.u32 %v184_v56, %v183_v51 }
  0xc2   :  { %v412_v53 = vsel %vm402_vm3, %v409_v38, %v411_v48  ;;  %v416_v55 = vsel %vm402_vm3, %v413_v39, %v415_v49  ;;  %v179_v2 = vshrl.u32 %v2102_v9, %v178_v31  ;;  %v189_v0 = vshll.u32 %v2105_v17, %v177_v11 }
  0xc3   :  { %v2226_v57 = vmul.u32.u64.low %v2195_v4, %v416_v55  ;;  %v2227_v58 = vmul.u32.u64.high %v2195_v4, %v416_v55, %v2226_v57  ;;  %v2230_v59 = vmul.u32.u64.low %v2195_v4, %v412_v53  ;;  %v2231_v60 = vmul.u32.u64.high %v2195_v4, %v412_v53, %v2230_v59 }
  0xc4   :  { %v190_v8 = vshrl.u32 %v2106_v19, %v178_v31  ;;  %v193_v10 = vshrl.u32 %v2107_v26, %v178_v31  ;;  %v424_v14 = vmul.u32 %v2195_v4, %v408_v52  ;;  %v188_v16 = vor.u32 %v187_v1, %v186_v63 }
  0xc5   :  { %v192_v18 = vshll.u32 %v2106_v19, %v177_v11  ;;  %vm426_vm7 = vc.u32 %v2227_v58, %v2230_v59  ;;  %v427_v20 = vadd.s32 1, %v2231_v60  ;;  %vm197_vm9 = vcmp.lt.s32.totalorder %v2197_v5, 3 }
  0xc6   :  { %v191_v21 = vor.u32 %v190_v8, %v189_v0  ;;  %vm198_vm10 = vcmp.lt.s32.totalorder %v2197_v5, 4  ;;  %v203_v23 = vsel %vm195_vm6, %v182_v61, %v185_v62  ;;  %v207_v11 = vsel %vm195_vm6, %v185_v62, %v188_v16 }
  0xc7   :  { %v194_v22 = vor.u32 %v193_v10, %v192_v18  ;;  %v428_v4 = vsel %vm426_vm7, %v427_v20, %v2231_v60  ;;  %v200_v24 = vsel %vm198_vm10, %v188_v16, 2102212464  ;;  %v199_v28 = vsel %vm195_vm6, %v179_v2, %v182_v61 }
  0xc8   :  { %v204_v25 = vsel %vm198_vm10, %v191_v21, 920167782  ;;  %v429_v27 = vadd.s32 %v428_v4, %v424_v14  ;;  %v201_v31 = vsel %vm197_vm9, %v185_v62, %v200_v24  ;;  %v482_v34 = vadd.s32 1, %v2203_v12 }
  0xc9   :  { %v205_v29 = vsel %vm197_vm9, %v188_v16, %v204_v25  ;;  %v208_v30 = vsel %vm198_vm10, %v194_v22, 1326507024  ;;  %v479_v47 = vand.u32 8388607, %v472_v7  ;;  %v202_v12 = vsel %vm196_vm8, %v199_v28, %v201_v31 }
  0xca   :  { %v206_v32 = vsel %vm196_vm8, %v203_v23, %v205_v29  ;;  %v209_v33 = vsel %vm197_vm9, %v191_v21, %v208_v30  ;;  %v430_v36 = vadd.s32 536870912, %v429_v27  ;;  %vm483_vm11 = vcmp.gt.s32.totalorder %v482_v34, 0 }
  0xcb   :  { %v210_v38 = vsel %vm196_vm8, %v207_v11, %v209_v33  ;;  %v2254_v39 = vmul.u32.u64.low %v2199_v6, %v206_v32  ;;  %v2255_v40 = vmul.u32.u64.high %v2199_v6, %v206_v32, %v2254_v39  ;;  %v484_v49 = vsel %vm483_vm11, %v482_v34, 0 }
  0xcc   :  { %v2259_v43 = vmul.u32.u64.low %v2199_v6, %v210_v38  ;;  %v2260_v45 = vmul.u32.u64.high %v2199_v6, %v210_v38, %v2259_v43  ;;  %v2264_v48 = vshrl.u32 %v430_v36, 30  ;;  %v486_v50 = vand.u32 31, %v484_v49 }
  0xcd   :  { %v221_v52 = vadd.s32 1, %v2255_v40  ;;  %v2272_v53 = vadd.f32 %v2169_v37, %v2193_v3  ;;  %v218_v55 = vmul.u32 %v2199_v6, %v202_v12  ;;  %v480_v56 = vor.u32 8388608, %v479_v47 }
  0xce   :  { %v432_v51 = vshll.u32 %v2264_v48, 30  ;;  %vm220_vm12 = vc.u32 %v2260_v45, %v2254_v39  ;;  %v487_v57 = vsub.s32 32, %v486_v50  ;;  %v425_v62 = vadd.s32 %v2230_v59, %v2227_v58 }
  0xcf   :  { %v222_v5 = vsel %vm220_vm12, %v221_v52, %v2255_v40  ;;  %v266_v1 = vand.u32 2147483647, %v2272_v53  ;;  %v2281_v0 = vshll.u32 %v480_v56, 8  ;;  %v269_v6 = vand.u32 2139095040, %v2272_v53 }
  0xd0   :  { %v433_v60 = vsub.s32 %v429_v27, %v432_v51  ;;  %v223_v61 = vadd.s32 %v222_v5, %v218_v55  ;;  %v496_v3 = vshrl.u32 %v2105_v17, %v487_v57  ;;  %v485_v10 = vshrl.u32 %v484_v49, 5 }
  0xd1   :  { %v490_v14 = vshrl.u32 %v2103_v13, %v487_v57  ;;  %v493_v16 = vshrl.u32 %v2104_v15, %v487_v57  ;;  %v455_v18 = vsub.s32 4, %v2264_v48  ;;  %v495_v58 = vshll.u32 %v2104_v15, %v486_v50 }
  0xd2   :  { %v435_v63 = vsub.s32 0, %v433_v60  ;;  %v224_v2 = vadd.s32 536870912, %v223_v61  ;;  %v499_v59 = vshrl.u32 %v2106_v19, %v487_v57  ;;  %v489_v22 = vshll.u32 %v2102_v9, %v486_v50 }
  0xd3   :  { %v492_v23 = vshll.u32 %v2103_v13, %v486_v50  ;;  %v498_v4 = vshll.u32 %v2105_v17, %v486_v50  ;;  %v497_v25 = vor.u32 %v496_v3, %v495_v58  ;;  %v502_v11 = vshrl.u32 %v2107_v26, %v487_v57 }
  0xd4   :  { %v1856_v8 = vmin.u32 %v435_v63, %v433_v60  ;;  %v2287_v20 = vshrl.u32 %v224_v2, 30  ;;  %v270_v27 = vshrl.u32 %v269_v6, 23  ;;  %v491_v29 = vor.u32 %v490_v14, %v489_v22 }
  0xd5   :  { %v494_v30 = vor.u32 %v493_v16, %v492_v23  ;;  %v500_v31 = vor.u32 %v499_v59, %v498_v4  ;;  %v488_v33 = vshrl.u32 %v2102_v9, %v487_v57  ;;  %v501_v34 = vshll.u32 %v2106_v19, %v486_v50 }
  0xd6   :  { %v437_v21 = vclz %v1856_v8  ;;  %v226_v24 = vshll.u32 %v2287_v20, 30  ;;  %vm504_vm13 = vcmp.lt.s32.totalorder %v485_v10, 1  ;;  %v249_v36 = vsub.s32 4, %v2287_v20 }
  0xd7   :  { %vm505_vm0 = vcmp.lt.s32.totalorder %v485_v10, 2  ;;  %vm507_vm1 = vcmp.lt.s32.totalorder %v485_v10, 4  ;;  %vm165_vm2 = vcmp.lt.s32.totalorder %v2177_v42, 0  ;;  %v503_v43 = vor.u32 %v502_v11, %v501_v34 }
  0xd8   :  { %v1857_v28 = vadd.s32 4294967294, %v437_v21  ;;  %v2296_v32 = vsub.s32 %v223_v61, %v226_v24  ;;  %v509_v47 = vsel %vm507_vm1, %v497_v25, 2102212464  ;;  %v512_v50 = vsel %vm504_vm13, %v491_v29, %v494_v30 }
  0xd9   :  { %v513_v51 = vsel %vm507_vm1, %v500_v31, 920167782  ;;  %vm506_vm3 = vcmp.lt.s32.totalorder %v485_v10, 3  ;;  %v508_v56 = vsel %vm504_vm13, %v488_v33, %v491_v29  ;;  %v516_v63 = vsel %vm504_vm13, %v494_v30, %v497_v25 }
  0xda   :  { %vm1858_vm15 = vcmp.lt.s32.totalorder %v1857_v28, 0  ;;  %v229_v40 = vsub.s32 0, %v2296_v32  ;;  %v514_v61 = vsel %vm506_vm3, %v497_v25, %v513_v51  ;;  %v510_v3 = vsel %vm506_vm3, %v494_v30, %v509_v47 }
  0xdb   :  { %v440_v38 = vsel %vm1858_vm15, 0, %v1857_v28  ;;  %v515_v6 = vsel %vm505_vm0, %v512_v50, %v514_v61  ;;  %v517_v8 = vsel %vm507_vm1, %v503_v43, 1326507024  ;;  %vm2314_vm4 = vcmp.le.f32.partialorder %v369_v44, 0.7853982  ;;  %v98_v43 = vpop.xlane.xlu1 %97 }
  0xdc   :  { %v441_v12 = vsub.s32 32, %v440_v38  ;;  %v445_v49 = vsub.s32 4294967266, %v440_v38  ;;  %v442_v52 = vshll.u32 %v433_v60, %v440_v38  ;;  %v1848_v55 = vmin.u32 %v229_v40, %v2296_v32 }
  0xdd   :  { %v518_v58 = vsel %vm506_vm3, %v500_v31, %v517_v8  ;;  %vm2320_vm5 = vcmp.le.f32.partialorder %v163_v46, 0.7853982  ;;  %v2326_v23 = vmul.u32.u64.low %v2281_v0, %v515_v6  ;;  %v2327_v4 = vmul.u32.u64.high %v2281_v0, %v515_v6, %v2326_v23 }
  0xde   :  { %v443_v57 = vshrl.u32 %v425_v62, %v441_v12  ;;  %v446_v5 = vadd.s32 127, %v445_v49  ;;  %v231_v2 = vclz %v1848_v55  ;;  %v1851_v62 = vadd.s32 4294967169, %v270_v27  ;;  %v96_v55 = vpop.xlane.xlu0 %95 }
  0xdf   :  { %v519_v22 = vsel %vm505_vm0, %v516_v63, %v518_v58  ;;  %v511_v24 = vsel %vm505_vm0, %v508_v56, %v510_v3  ;;  %v456_v46 = vsel %vm371_vm14, %v455_v18, %v2264_v48  ;;  %v219_v27 = vadd.s32 %v2254_v39, %v2260_v45 }
  0xe0   :  { %v444_v14 = vor.u32 %v443_v57, %v442_v52  ;;  %v447_v16 = vshll.u32 %v446_v5, 23  ;;  %v1849_v21 = vadd.s32 4294967294, %v231_v2  ;;  %v276_v28 = vadd.s32 1, %v1851_v62 }
  0xe1   :  { %v2332_v25 = vmul.u32.u64.low %v2281_v0, %v519_v22  ;;  %v2333_v11 = vmul.u32.u64.high %v2281_v0, %v519_v22, %v2332_v25  ;;  %v250_v10 = vsel %vm165_vm2, %v249_v36, %v2287_v20  ;;  %v527_v38 = vmul.u32 %v2281_v0, %v511_v24 }
  0xe2   :  { %v448_v44 = vor.u32 4788187, %v447_v16  ;;  %vm1850_vm6 = vcmp.lt.s32.totalorder %v1849_v21, 0  ;;  %v451_v30 = vcvt.s32.f32 %v444_v14  ;;  %v530_v40 = vadd.s32 1, %v2327_v4 }
  0xe3   :  { %v234_v31 = vsel %vm1850_vm6, 0, %v1849_v21  ;;  %vm529_vm7 = vc.u32 %v2333_v11, %v2326_v23  ;;  %vm277_vm8 = vcmp.gt.s32.totalorder %v276_v28, 0  ;;  %v130_v0 = vmul.f32 %v2164_v35, %v98_v43 }
  0xe4   :  { %v449_v29 = vand.u32 2147483647, %v448_v44  ;;  %v235_v33 = vsub.s32 32, %v234_v31  ;;  %v239_v34 = vsub.s32 4294967266, %v234_v31  ;;  %v236_v18 = vshll.u32 %v2296_v32, %v234_v31 }
  0xe5   :  { %v531_v47 = vsel %vm529_vm7, %v530_v40, %v2327_v4  ;;  %v278_v12 = vsel %vm277_vm8, %v276_v28, 0  ;;  %v458_v50 = vsel %vm2314_vm4, 0, %v456_v46  ;;  %v273_v32 = vand.u32 8388607, %v266_v1 }
  0xe6   :  { %v452_v48 = vmul.f32 %v451_v30, %v449_v29  ;;  %v237_v39 = vshrl.u32 %v219_v27, %v235_v33  ;;  %v240_v45 = vadd.s32 127, %v239_v34  ;;  %v532_v36 = vadd.s32 %v531_v47, %v527_v38 }
  0xe7   :  { %v280_v49 = vand.u32 31, %v278_v12  ;;  %v252_v57 = vsel %vm2320_vm5, 0, %v250_v10  ;;  %v2361_v3 = vand.u32 3, %v458_v50  ;;  %v2366_v8 = vmul.f32 %v2164_v35, %v96_v55 }
  0xe8   :  { %v453_v20 = vxor.u32 2147483648, %v452_v48  ;;  %v238_v51 = vor.u32 %v237_v39, %v236_v18  ;;  %v241_v52 = vshll.u32 %v240_v45, 23  ;;  %v533_v5 = vadd.s32 536870912, %v532_v36 }
  0xe9   :  { %v281_v61 = vsub.s32 32, %v280_v49  ;;  %v2368_v58 = vand.u32 3, %v252_v57  ;;  %v274_v21 = vor.u32 8388608, %v273_v32  ;;  %v2373_v22 = vadd.f32 %v2169_v37, %v130_v0 }
  0xea   :  { %v454_v56 = vsel %vm371_vm14, %v453_v20, %v452_v48  ;;  %v242_v2 = vor.u32 4788187, %v241_v52  ;;  %v2363_v6 = vshrl.u32 %v533_v5, 30  ;;  %v245_v16 = vcvt.s32.f32 %v238_v51 }
  0xeb   :  { %v457_v63 = vsel %vm2314_vm4, %v2174_v41, %v454_v56  ;;  %v284_v60 = vshrl.u32 %v2103_v13, %v281_v61  ;;  %v287_v44 = vshrl.u32 %v2104_v15, %v281_v61  ;;  %v290_v24 = vshrl.u32 %v2105_v17, %v281_v61 }
  0xec   :  { %1985 = vcosq.f32 %v457_v63  ;;  %v243_v14 = vand.u32 2147483647, %v242_v2  ;;  %v535_v62 = vshll.u32 %v2363_v6, 30  ;;  %v293_v25 = vshrl.u32 %v2106_v19, %v281_v61 }
  0xed   :  { %1987 = vsinq.f32 %v457_v63  ;;  %vm467_vm9 = vcmp.eq.s32.totalorder %v2361_v3, 2  ;;  %v2381_v27 = vshrl.u32 %v278_v12, 5  ;;  %v283_v28 = vshll.u32 %v2102_v9, %v280_v49 }
  0xee   :  { %v246_v4 = vmul.f32 %v245_v16, %v243_v14  ;;  %v2379_v46 = vsub.s32 %v532_v36, %v535_v62  ;;  %v286_v29 = vshll.u32 %v2103_v13, %v280_v49  ;;  %vm464_vm10 = vcmp.eq.s32.totalorder %v2361_v3, 0 }
  0xef   :  { %v289_v31 = vshll.u32 %v2104_v15, %v280_v49  ;;  %v292_v10 = vshll.u32 %v2105_v17, %v280_v49  ;;  %v296_v33 = vshrl.u32 %v2107_v26, %v281_v61  ;;  %vm463_vm11 = vcmp.lt.s32.totalorder %v2361_v3, 2 }
  0xf0   :  { %v247_v30 = vxor.u32 2147483648, %v246_v4  ;;  %v528_v34 = vadd.s32 %v2326_v23, %v2333_v11  ;;  %v538_v38 = vsub.s32 0, %v2379_v46  ;;  %v285_v40 = vor.u32 %v284_v60, %v283_v28 }
  0xf1   :  { %v295_v43 = vshll.u32 %v2106_v19, %v280_v49  ;;  %vm461_vm12 = vweird.f32 %v2174_v41  ;;  %v288_v18 = vor.u32 %v287_v44, %v286_v29  ;;  %v291_v39 = vor.u32 %v290_v24, %v289_v31 }
  0xf2   :  { %v248_v48 = vsel %vm165_vm2, %v247_v30, %v246_v4  ;;  %v294_v45 = vor.u32 %v293_v25, %v292_v10  ;;  %v1860_v12 = vmin.u32 %v538_v38, %v2379_v46  ;;  %v2401_v11 = vshll.u32 %v274_v21, 8 }
  0xf3   :  { %v251_v47 = vsel %vm2320_vm5, %v2177_v42, %v248_v48  ;;  %v297_v23 = vor.u32 %v296_v33, %v295_v43  ;;  %v282_v20 = vshrl.u32 %v2102_v9, %v281_v61  ;;  %vm298_vm13 = vcmp.lt.s32.totalorder %v2381_v27, 1 }
  0xf4   :  { %1989 = vcosq.f32 %v251_v47  ;;  %vm299_vm14 = vcmp.lt.s32.totalorder %v2381_v27, 2  ;;  %v540_v49 = vclz %v1860_v12  ;;  %vm300_vm15 = vcmp.lt.s32.totalorder %v2381_v27, 3 }
  0xf5   :  { %1991 = vsinq.f32 %v251_v47  ;;  %vm301_vm0 = vcmp.lt.s32.totalorder %v2381_v27, 4  ;;  %v306_v50 = vsel %vm298_vm13, %v285_v40, %v288_v18  ;;  %v310_v52 = vsel %vm298_vm13, %v288_v18, %v291_v39 }
  0xf6   :  { %v1986_v36 = vpop.eup %1985  ;;  %v307_v51 = vsel %vm301_vm0, %v294_v45, 920167782  ;;  %v1861_v55 = vadd.s32 4294967294, %v540_v49  ;;  %v311_v57 = vsel %vm301_vm0, %v297_v23, 1326507024  ;;  %vm474_vm1 = vcmp.lt.s32.totalorder %v2189_v54, 0 }
  0xf7   :  { %v1988_v59 = vpop.eup %1987  ;;  %v468_v0 = vxor.u32 2147483648, %v1986_v36  ;;  %v308_v56 = vsel %vm300_vm15, %v291_v39, %v307_v51  ;;  %v302_v61 = vsel %vm298_vm13, %v282_v20, %v285_v40  ;;  %v303_v63 = vsel %vm301_vm0, %v291_v39, 2102212464 }
  0xf8   :  { %v465_v32 = vxor.u32 2147483648, %v1988_v59  ;;  %v312_v2 = vsel %vm300_vm15, %v294_v45, %v311_v57  ;;  %vm1862_vm2 = vcmp.lt.s32.totalorder %v1861_v55, 0  ;;  %v309_v16 = vsel %vm299_vm14, %v306_v50, %v308_v56 }
  0xf9   :  { %v469_v5 = vsel %vm467_vm9, %v468_v0, %v1988_v59  ;;  %v313_v62 = vsel %vm299_vm14, %v310_v52, %v312_v2  ;;  %v543_v60 = vsel %vm1862_vm2, 0, %v1861_v55  ;;  %vm255_vm3 = vweird.f32 %v2177_v42 }
  0xfa   :  { %v466_v14 = vsel %vm464_vm10, %v1986_v36, %v465_v32  ;;  %v2430_v4 = vmul.u32.u64.low %v2401_v11, %v313_v62  ;;  %v2431_v44 = vmul.u32.u64.high %v2401_v11, %v313_v62, %v2430_v4  ;;  %vm2438_vm4 = vcmp.le.f32.partialorder %v472_v7, 0.7853982 }
  0xfb   :  { %v470_v21 = vsel %vm463_vm11, %v466_v14, %v469_v5  ;;  %v544_v28 = vsub.s32 32, %v543_v60  ;;  %v548_v29 = vsub.s32 4294967266, %v543_v60  ;;  %v304_v3 = vsel %vm300_vm15, %v288_v18, %v303_v63  ;;  %v102_v63 = vpop.xlane.xlu1 %101 }
  0xfc   :  { %v471_v24 = vsel %vm461_vm12, nan, %v470_v21  ;;  %vm258_vm5 = vcmp.eq.s32.totalorder %v2368_v58, 0  ;;  %v2446_v30 = vmul.u32.u64.low %v2401_v11, %v309_v16  ;;  %v2447_v41 = vmul.u32.u64.high %v2401_v11, %v309_v16, %v2446_v30 }
  0xfd   :  { %1813 = vst [vmem:[#allocation5 + $0x10] sm:$0xff] %v471_v24  ;;  %v681_v31 = vand.u32 2139095040, %v2373_v22  ;;  %v545_v10 = vshll.u32 %v2379_v46, %v543_v60  ;;  %v546_v7 = vshrl.u32 %v528_v34, %v544_v28  ;;  %v549_v33 = vadd.s32 127, %v548_v29 }
  0xfe   :  { %v558_v38 = vsub.s32 4, %v2363_v6  ;;  %v1990_v40 = vpop.eup %1989  ;;  %vm261_vm6 = vcmp.eq.s32.totalorder %v2368_v58, 2  ;;  %v305_v43 = vsel %vm299_vm14, %v302_v61, %v304_v3  ;;  %v2457_v18 = vadd.f32 %v2169_v37, %v2366_v8 }
  0xff   :  { %v682_v48 = vshrl.u32 %v681_v31, 23  ;;  %v1992_v39 = vpop.eup %1991  ;;  %v262_v45 = vxor.u32 2147483648, %v1990_v40  ;;  %v547_v47 = vor.u32 %v546_v7, %v545_v10  ;;  %v550_v12 = vshll.u32 %v549_v33, 23 }
 0x100   :  { %vm323_vm7 = vc.u32 %v2431_v44, %v2446_v30  ;;  %v259_v46 = vxor.u32 2147483648, %v1992_v39  ;;  %v324_v34 = vadd.s32 1, %v2447_v41  ;;  %v678_v23 = vand.u32 2147483647, %v2373_v22 }
 0x101   :  { %v1867_v20 = vadd.s32 4294967169, %v682_v48  ;;  %v263_v36 = vsel %vm261_vm6, %v262_v45, %v1992_v39  ;;  %v551_v27 = vor.u32 4788187, %v550_v12  ;;  %v559_v49 = vsel %vm474_vm1, %v558_v38, %v2363_v6 }
 0x102   :  { %v321_v8 = vmul.u32 %v2401_v11, %v305_v43  ;;  %vm257_vm8 = vcmp.lt.s32.totalorder %v2368_v58, 2  ;;  %v260_v59 = vsel %vm258_vm5, %v1990_v40, %v259_v46  ;;  %v325_v0 = vsel %vm323_vm7, %v324_v34, %v2447_v41 }
 0x103   :  { %v688_v50 = vadd.s32 1, %v1867_v20  ;;  %v264_v51 = vsel %vm257_vm8, %v260_v59, %v263_v36  ;;  %v552_v52 = vand.u32 2147483647, %v551_v27  ;;  %v554_v32 = vcvt.s32.f32 %v547_v47 }
 0x104   :  { %v326_v55 = vadd.s32 %v325_v0, %v321_v8  ;;  %v265_v56 = vsel %vm255_vm3, nan, %v264_v51  ;;  %v561_v6 = vsel %vm2438_vm4, 0, %v559_v49  ;;  %v685_v11 = vand.u32 8388607, %v678_v23 }
 0x105   :  { %vm689_vm9 = vcmp.gt.s32.totalorder %v688_v50, 0  ;;  %1811 = vst [vmem:[#allocation5] sm:$0xff] %v265_v56  ;;  %v555_v58 = vmul.f32 %v554_v32, %v552_v52  ;;  %v578_v61 = vand.u32 2139095040, %v2457_v18  ;;  %v2479_v42 = vand.u32 3, %v561_v6 }
 0x106   :  { %v327_v57 = vadd.s32 536870912, %v326_v55  ;;  %v690_v5 = vsel %vm689_vm9, %v688_v50, 0  ;;  %v2482_v62 = vadd.s32 %v2446_v30, %v2431_v44  ;;  %v2485_v60 = vmul.f32 %v2164_v35, %v102_v63 }
 0x107   :  { %v692_v2 = vand.u32 31, %v690_v5  ;;  %v556_v14 = vxor.u32 2147483648, %v555_v58  ;;  %v686_v28 = vor.u32 8388608, %v685_v11  ;;  %v579_v29 = vshrl.u32 %v578_v61, 23 }
 0x108   :  { %v2477_v16 = vshrl.u32 %v327_v57, 30  ;;  %v691_v7 = vshrl.u32 %v690_v5, 5  ;;  %v575_v25 = vand.u32 2147483647, %v2457_v18  ;;  %vm570_vm10 = vcmp.eq.s32.totalorder %v2479_v42, 2 }
 0x109   :  { %v693_v21 = vsub.s32 32, %v692_v2  ;;  %v557_v4 = vsel %vm474_vm1, %v556_v14, %v555_v58  ;;  %v695_v41 = vshll.u32 %v2102_v9, %v692_v2  ;;  %v698_v31 = vshll.u32 %v2103_v13, %v692_v2 }
 0x10a   :  { %v329_v24 = vshll.u32 %v2477_v16, 30  ;;  %v560_v3 = vsel %vm2438_vm4, %v2189_v54, %v557_v4  ;;  %v701_v33 = vshll.u32 %v2104_v15, %v692_v2  ;;  %v704_v45 = vshll.u32 %v2105_v17, %v692_v2 }
 0x10b   :  { %v696_v44 = vshrl.u32 %v2103_v13, %v693_v21  ;;  %v699_v30 = vshrl.u32 %v2104_v15, %v693_v21  ;;  %1993 = vcosq.f32 %v560_v3  ;;  %v702_v10 = vshrl.u32 %v2105_v17, %v693_v21 }
 0x10c   :  { %v2496_v35 = vsub.s32 %v326_v55, %v329_v24  ;;  %1995 = vsinq.f32 %v560_v3  ;;  %v705_v48 = vshrl.u32 %v2106_v19, %v693_v21  ;;  %v707_v47 = vshll.u32 %v2106_v19, %v692_v2 }
 0x10d   :  { %v697_v40 = vor.u32 %v696_v44, %v695_v41  ;;  %v700_v43 = vor.u32 %v699_v30, %v698_v31  ;;  %v703_v39 = vor.u32 %v702_v10, %v701_v33  ;;  %v708_v12 = vshrl.u32 %v2107_v26, %v693_v21 }
 0x10e   :  { %v332_v38 = vsub.s32 0, %v2496_v35  ;;  %vm268_vm11 = vcmp.lt.s32.totalorder %v2272_v53, 0  ;;  %v352_v34 = vsub.s32 4, %v2477_v16  ;;  %v726_v20 = vshll.u32 %v686_v28, 8 }
 0x10f   :  { %v1863_v36 = vadd.s32 4294967169, %v579_v29  ;;  %vm567_vm12 = vcmp.eq.s32.totalorder %v2479_v42, 0  ;;  %v694_v27 = vshrl.u32 %v2102_v9, %v693_v21  ;;  %v706_v49 = vor.u32 %v705_v48, %v704_v45 }
 0x110   :  { %v1852_v46 = vmin.u32 %v332_v38, %v2496_v35  ;;  %v709_v8 = vor.u32 %v708_v12, %v707_v47  ;;  %vm710_vm13 = vcmp.lt.s32.totalorder %v691_v7, 1  ;;  %vm566_vm14 = vcmp.lt.s32.totalorder %v2479_v42, 2 }
 0x111   :  { %vm712_vm15 = vcmp.lt.s32.totalorder %v691_v7, 3  ;;  %vm713_vm0 = vcmp.lt.s32.totalorder %v691_v7, 4  ;;  %v718_v0 = vsel %vm710_vm13, %v697_v40, %v700_v43  ;;  %vm564_vm1 = vweird.f32 %v2189_v54 }
 0x112   :  { %v334_v59 = vclz %v1852_v46  ;;  %v715_v50 = vsel %vm713_vm0, %v703_v39, 2102212464  ;;  %v719_v51 = vsel %vm713_vm0, %v706_v49, 920167782  ;;  %v722_v52 = vsel %vm710_vm13, %v700_v43, %v703_v39 }
 0x113   :  { %v723_v32 = vsel %vm713_vm0, %v709_v8, 1326507024  ;;  %vm711_vm2 = vcmp.lt.s32.totalorder %v691_v7, 2  ;;  %v720_v56 = vsel %vm712_vm15, %v703_v39, %v719_v51  ;;  %v714_v11 = vsel %vm710_vm13, %v694_v27, %v697_v40 }
 0x114   :  { %v1853_v55 = vadd.s32 4294967294, %v334_v59  ;;  %v724_v6 = vsel %vm712_vm15, %v706_v49, %v723_v32  ;;  %v721_v58 = vsel %vm711_vm2, %v718_v0, %v720_v56  ;;  %v585_v5 = vadd.s32 1, %v1863_v36 }
 0x115   :  { %v725_v57 = vsel %vm711_vm2, %v722_v52, %v724_v6  ;;  %v1994_v61 = vpop.eup %1993  ;;  %v716_v63 = vsel %vm712_vm15, %v700_v43, %v715_v50  ;;  %v2523_v28 = vmul.u32.u64.low %v726_v20, %v721_v58  ;;  %v2524_v29 = vmul.u32.u64.high %v726_v20, %v721_v58, %v2523_v28 }
 0x116   :  { %vm1854_vm3 = vcmp.lt.s32.totalorder %v1853_v55, 0  ;;  %v2520_v2 = vmul.u32.u64.low %v726_v20, %v725_v57  ;;  %v2521_v14 = vmul.u32.u64.high %v726_v20, %v725_v57, %v2520_v2  ;;  %v1996_v21 = vpop.eup %1995  ;;  %v571_v4 = vxor.u32 2147483648, %v1994_v61 }
 0x117   :  { %v337_v24 = vsel %vm1854_vm3, 0, %v1853_v55  ;;  %v568_v3 = vxor.u32 2147483648, %v1996_v21  ;;  %v582_v30 = vand.u32 8388607, %v575_v25  ;;  %v353_v10 = vsel %vm268_vm11, %v352_v34, %v2477_v16 }
 0x118   :  { %v338_v41 = vsub.s32 32, %v337_v24  ;;  %v342_v44 = vsub.s32 4294967266, %v337_v24  ;;  %v572_v31 = vsel %vm570_vm10, %v571_v4, %v1996_v21  ;;  %v717_v33 = vsel %vm711_vm2, %v714_v11, %v716_v63 }
 0x119   :  { %vm586_vm4 = vcmp.gt.s32.totalorder %v585_v5, 0  ;;  %v569_v38 = vsel %vm567_vm12, %v1994_v61, %v568_v3  ;;  %v339_v40 = vshll.u32 %v2496_v35, %v337_v24  ;;  %vm735_vm5 = vc.u32 %v2521_v14, %v2523_v28 }
 0x11a   :  { %v340_v43 = vshrl.u32 %v2482_v62, %v338_v41  ;;  %v343_v48 = vadd.s32 127, %v342_v44  ;;  %v573_v39 = vsel %vm566_vm14, %v569_v38, %v572_v31  ;;  %v736_v45 = vadd.s32 1, %v2524_v29 }
 0x11b   :  { %v587_v16 = vsel %vm586_vm4, %v585_v5, 0  ;;  %v574_v7 = vsel %vm564_vm1, nan, %v573_v39  ;;  %v733_v46 = vmul.u32 %v726_v20, %v717_v33  ;;  %vm2549_vm6 = vcmp.le.f32.partialorder %v266_v1, 0.7853982 }
 0x11c   :  { %v341_v47 = vor.u32 %v340_v43, %v339_v40  ;;  %v344_v12 = vshll.u32 %v343_v48, 23  ;;  %1814 = vst [vmem:[#allocation5 + $0x18] sm:$0xff] %v574_v7  ;;  %v737_v35 = vsel %vm735_vm5, %v736_v45, %v2524_v29  ;;  %v589_v62 = vand.u32 31, %v587_v16 }
 0x11d   :  { %v738_v36 = vadd.s32 %v737_v35, %v733_v46  ;;  %v583_v27 = vor.u32 8388608, %v582_v30  ;;  %v355_v54 = vsel %vm2549_vm6, 0, %v353_v10  ;;  %v2557_v20 = vadd.f32 %v2169_v37, %v2485_v60 }
 0x11e   :  { %v345_v34 = vor.u32 4788187, %v344_v12  ;;  %v348_v49 = vcvt.s32.f32 %v341_v47  ;;  %v590_v8 = vsub.s32 32, %v589_v62  ;;  %v592_v50 = vshll.u32 %v2102_v9, %v589_v62 }
 0x11f   :  { %v739_v0 = vadd.s32 536870912, %v738_v36  ;;  %v595_v1 = vshll.u32 %v2103_v13, %v589_v62  ;;  %v598_v32 = vshll.u32 %v2104_v15, %v589_v62  ;;  %v588_v60 = vshrl.u32 %v587_v16, 5 }
 0x120   :  { %v346_v59 = vand.u32 2147483647, %v345_v34  ;;  %v593_v51 = vshrl.u32 %v2103_v13, %v590_v8  ;;  %v596_v52 = vshrl.u32 %v2104_v15, %v590_v8  ;;  %v599_v55 = vshrl.u32 %v2105_v17, %v590_v8 }
 0x121   :  { %v740_v6 = vshrl.u32 %v739_v0, 30  ;;  %v602_v11 = vshrl.u32 %v2106_v19, %v590_v8  ;;  %v605_v37 = vshrl.u32 %v2107_v26, %v590_v8  ;;  %v601_v57 = vshll.u32 %v2105_v17, %v589_v62 }
 0x122   :  { %v349_v56 = vmul.f32 %v348_v49, %v346_v59  ;;  %v594_v58 = vor.u32 %v593_v51, %v592_v50  ;;  %v604_v5 = vshll.u32 %v2106_v19, %v589_v62  ;;  %v597_v2 = vor.u32 %v596_v52, %v595_v1 }
 0x123   :  { %v741_v63 = vshll.u32 %v740_v6, 30  ;;  %v600_v21 = vor.u32 %v599_v55, %v598_v32  ;;  %v2569_v4 = vand.u32 3, %v355_v54  ;;  %v603_v24 = vor.u32 %v602_v11, %v601_v57 }
 0x124   :  { %v350_v61 = vxor.u32 2147483648, %v349_v56  ;;  %v606_v29 = vor.u32 %v605_v37, %v604_v5  ;;  %v623_v44 = vshll.u32 %v583_v27, 8  ;;  %v887_v30 = vand.u32 2139095040, %v2557_v20 }
 0x125   :  { %v2573_v41 = vsub.s32 %v738_v36, %v741_v63  ;;  %v591_v10 = vshrl.u32 %v2102_v9, %v590_v8  ;;  %vm607_vm7 = vcmp.lt.s32.totalorder %v588_v60, 1  ;;  %vm610_vm8 = vcmp.lt.s32.totalorder %v588_v60, 4 }
 0x126   :  { %v351_v3 = vsel %vm268_vm11, %v350_v61, %v349_v56  ;;  %v612_v38 = vsel %vm610_vm8, %v600_v21, 2102212464  ;;  %v615_v40 = vsel %vm607_vm7, %v594_v58, %v597_v2  ;;  %v616_v43 = vsel %vm610_vm8, %v603_v24, 920167782 }
 0x127   :  { %v354_v31 = vsel %vm2549_vm6, %v2272_v53, %v351_v3  ;;  %v744_v33 = vsub.s32 0, %v2573_v41  ;;  %v619_v48 = vsel %vm607_vm7, %v597_v2, %v600_v21  ;;  %v620_v39 = vsel %vm610_vm8, %v606_v29, 1326507024 }
 0x128   :  { %1997 = vcosq.f32 %v354_v31  ;;  %v764_v16 = vsub.s32 4, %v740_v6  ;;  %vm608_vm9 = vcmp.lt.s32.totalorder %v588_v60, 2  ;;  %vm609_vm10 = vcmp.lt.s32.totalorder %v588_v60, 3 }
 0x129   :  { %1999 = vsinq.f32 %v354_v31  ;;  %v1868_v45 = vmin.u32 %v744_v33, %v2573_v41  ;;  %v611_v7 = vsel %vm607_vm7, %v591_v10, %v594_v58  ;;  %v617_v47 = vsel %vm609_vm10, %v600_v21, %v616_v43  ;;  %v100_v21 = vpop.xlane.xlu0 %99 }
 0x12a   :  { %v621_v12 = vsel %vm609_vm10, %v603_v24, %v620_v39  ;;  %v888_v46 = vshrl.u32 %v887_v30, 23  ;;  %v613_v62 = vsel %vm609_vm10, %v597_v2, %v612_v38  ;;  %v618_v42 = vsel %vm608_vm9, %v615_v40, %v617_v47  ;;  %v2626_v40 = vld [vmem:[%s3420_s1] ss:$0 sm:$0xff] }
 0x12b   :  { %v746_v35 = vclz %v1868_v45  ;;  %v622_v34 = vsel %vm608_vm9, %v619_v48, %v621_v12  ;;  %v2587_v49 = vmul.u32.u64.low %v623_v44, %v618_v42  ;;  %v2588_v54 = vmul.u32.u64.high %v623_v44, %v618_v42, %v2587_v49 }
 0x12c   :  { %v2584_v36 = vmul.u32.u64.low %v623_v44, %v622_v34  ;;  %v2585_v27 = vmul.u32.u64.high %v623_v44, %v622_v34, %v2584_v36  ;;  %vm2593_vm11 = vcmp.le.f32.partialorder %v678_v23, 0.7853982  ;;  %vm680_vm12 = vcmp.lt.s32.totalorder %v2373_v22, 0 }
 0x12d   :  { %v1869_v59 = vadd.s32 4294967294, %v746_v35  ;;  %v1875_v0 = vadd.s32 4294967169, %v888_v46  ;;  %vm360_vm13 = vcmp.lt.s32.totalorder %v2569_v4, 2  ;;  %vm361_vm14 = vcmp.eq.s32.totalorder %v2569_v4, 0  ;;  %v2643_v36 = vld [vmem:[%s3421_s2] ss:$0 sm:$0xff] }
 0x12e   :  { %vm364_vm15 = vcmp.eq.s32.totalorder %v2569_v4, 2  ;;  %v614_v50 = vsel %vm608_vm9, %v611_v7, %v613_v62  ;;  %v734_v1 = vadd.s32 %v2523_v28, %v2521_v14  ;;  %v884_v23 = vand.u32 2147483647, %v2557_v20 }
 0x12f   :  { %vm1870_vm0 = vcmp.lt.s32.totalorder %v1869_v59, 0  ;;  %v894_v51 = vadd.s32 1, %v1875_v0  ;;  %v765_v32 = vsel %vm680_vm12, %v764_v16, %v740_v6  ;;  %vm632_vm1 = vc.u32 %v2585_v27, %v2587_v49 }
 0x130   :  { %v749_v52 = vsel %vm1870_vm0, 0, %v1869_v59  ;;  %v633_v55 = vadd.s32 1, %v2588_v54  ;;  %v630_v60 = vmul.u32 %v623_v44, %v614_v50  ;;  %v767_v29 = vsel %vm2593_vm11, 0, %v765_v32 }
 0x131   :  { %v750_v11 = vsub.s32 32, %v749_v52  ;;  %v754_v37 = vsub.s32 4294967266, %v749_v52  ;;  %vm895_vm2 = vcmp.gt.s32.totalorder %v894_v51, 0  ;;  %v751_v28 = vshll.u32 %v2573_v41, %v749_v52 }
 0x132   :  { %v1998_v56 = vpop.eup %1997  ;;  %v634_v57 = vsel %vm632_vm1, %v633_v55, %v2588_v54  ;;  %v896_v5 = vsel %vm895_vm2, %v894_v51, 0  ;;  %v891_v3 = vand.u32 8388607, %v884_v23  ;;  %vm358_vm3 = vweird.f32 %v2272_v53 }
 0x133   :  { %v2000_v58 = vpop.eup %1999  ;;  %v365_v14 = vxor.u32 2147483648, %v1998_v56  ;;  %v752_v63 = vshrl.u32 %v734_v1, %v750_v11  ;;  %v755_v6 = vadd.s32 127, %v754_v37  ;;  %v635_v2 = vadd.s32 %v634_v57, %v630_v60 }
 0x134   :  { %v362_v61 = vxor.u32 2147483648, %v2000_v58  ;;  %v898_v44 = vand.u32 31, %v896_v5  ;;  %v131_v43 = vmul.f32 %v2626_v40, %v100_v21  ;;  %v2631_v16 = vand.u32 3, %v767_v29 }
 0x135   :  { %v366_v24 = vsel %vm364_vm15, %v365_v14, %v2000_v58  ;;  %v753_v30 = vor.u32 %v752_v63, %v751_v28  ;;  %v756_v31 = vshll.u32 %v755_v6, 23  ;;  %v636_v10 = vadd.s32 536870912, %v635_v2 }
 0x136   :  { %v363_v41 = vsel %vm361_vm14, %v1998_v56, %v362_v61  ;;  %v899_v38 = vsub.s32 32, %v898_v44  ;;  %v892_v7 = vor.u32 8388608, %v891_v3  ;;  %v901_v62 = vshll.u32 %v2102_v9, %v898_v44 }
 0x137   :  { %v367_v33 = vsel %vm360_vm13, %v363_v41, %v366_v24  ;;  %v757_v39 = vor.u32 4788187, %v756_v31  ;;  %v2629_v45 = vshrl.u32 %v636_v10, 30  ;;  %v760_v12 = vcvt.s32.f32 %v753_v30 }
 0x138   :  { %v368_v48 = vsel %vm358_vm3, nan, %v367_v33  ;;  %v902_v53 = vshrl.u32 %v2103_v13, %v899_v38  ;;  %v905_v4 = vshrl.u32 %v2104_v15, %v899_v38  ;;  %v908_v35 = vshrl.u32 %v2105_v17, %v899_v38 }
 0x139   :  { %1812 = vst [vmem:[#allocation5 + $0x8] sm:$0xff] %v368_v48  ;;  %v758_v47 = vand.u32 2147483647, %v757_v39  ;;  %v638_v46 = vshll.u32 %v2629_v45, 30  ;;  %v904_v42 = vshll.u32 %v2103_v13, %v898_v44  ;;  %v911_v34 = vshrl.u32 %v2106_v19, %v899_v38 }
 0x13a   :  { %v2646_v54 = vadd.f32 %v2643_v36, %v131_v43  ;;  %v897_v50 = vshrl.u32 %v896_v5, 5  ;;  %v907_v1 = vshll.u32 %v2104_v15, %v898_v44  ;;  %v903_v51 = vor.u32 %v902_v53, %v901_v62 }
 0x13b   :  { %v761_v59 = vmul.f32 %v760_v12, %v758_v47  ;;  %v2648_v0 = vsub.s32 %v635_v2, %v638_v46  ;;  %v906_v52 = vor.u32 %v905_v4, %v904_v42  ;;  %v910_v32 = vshll.u32 %v2105_v17, %v898_v44 }
 0x13c   :  { %v914_v55 = vshrl.u32 %v2107_v26, %v899_v38  ;;  %v909_v37 = vor.u32 %v908_v35, %v907_v1  ;;  %v913_v60 = vshll.u32 %v2106_v19, %v898_v44  ;;  %v900_v58 = vshrl.u32 %v2102_v9, %v899_v38 }
 0x13d   :  { %v762_v56 = vxor.u32 2147483648, %v761_v59  ;;  %v641_v11 = vsub.s32 0, %v2648_v0  ;;  %v912_v14 = vor.u32 %v911_v34, %v910_v32  ;;  %v932_v28 = vshll.u32 %v892_v7, 8 }
 0x13e   :  { %v781_v57 = vand.u32 2147483647, %v2646_v54  ;;  %vm577_vm4 = vcmp.lt.s32.totalorder %v2457_v18, 0  ;;  %v661_v63 = vsub.s32 4, %v2629_v45  ;;  %v915_v6 = vor.u32 %v914_v55, %v913_v60 }
 0x13f   :  { %v763_v5 = vsel %vm680_vm12, %v762_v56, %v761_v59  ;;  %v1864_v61 = vmin.u32 %v641_v11, %v2648_v0  ;;  %vm916_vm5 = vcmp.lt.s32.totalorder %v897_v50, 1  ;;  %vm917_vm6 = vcmp.lt.s32.totalorder %v897_v50, 2 }
 0x140   :  { %v766_v2 = vsel %vm2593_vm11, %v2373_v22, %v763_v5  ;;  %vm919_vm7 = vcmp.lt.s32.totalorder %v897_v50, 4  ;;  %v924_v29 = vsel %vm916_vm5, %v903_v51, %v906_v52  ;;  %vm918_vm8 = vcmp.lt.s32.totalorder %v897_v50, 3 }
 0x141   :  { %2001 = vcosq.f32 %v766_v2  ;;  %v643_v21 = vclz %v1864_v61  ;;  %v921_v24 = vsel %vm919_vm7, %v909_v37, 2102212464  ;;  %v925_v3 = vsel %vm919_vm7, %v912_v14, 920167782 }
 0x142   :  { %2003 = vsinq.f32 %v766_v2  ;;  %v928_v44 = vsel %vm916_vm5, %v906_v52, %v909_v37  ;;  %v920_v30 = vsel %vm916_vm5, %v900_v58, %v903_v51  ;;  %v926_v31 = vsel %vm918_vm8, %v909_v37, %v925_v3 }
 0x143   :  { %v1865_v41 = vadd.s32 4294967294, %v643_v21  ;;  %v929_v10 = vsel %vm919_vm7, %v915_v6, 1326507024  ;;  %v922_v33 = vsel %vm918_vm8, %v906_v52, %v921_v24  ;;  %v927_v38 = vsel %vm917_vm6, %v924_v29, %v926_v31  ;;  %v106_v52 = vpop.xlane.xlu1 %105  ;;  %v104_v29 = vpop.xlane.xlu0 %103 }
 0x144   :  { %v930_v8 = vsel %vm918_vm8, %v912_v14, %v929_v10  ;;  %v784_v43 = vand.u32 2139095040, %v2646_v54  ;;  %v2668_v39 = vmul.u32.u64.low %v932_v28, %v927_v38  ;;  %v2669_v7 = vmul.u32.u64.high %v932_v28, %v927_v38, %v2668_v39 }
 0x145   :  { %vm1866_vm9 = vcmp.lt.s32.totalorder %v1865_v41, 0  ;;  %v931_v48 = vsel %vm917_vm6, %v928_v44, %v930_v8  ;;  %v631_v46 = vadd.s32 %v2587_v49, %v2585_v27  ;;  %v923_v42 = vsel %vm917_vm6, %v920_v30, %v922_v33 }
 0x146   :  { %v646_v53 = vsel %vm1866_vm9, 0, %v1865_v41  ;;  %v2672_v4 = vmul.u32.u64.low %v932_v28, %v931_v48  ;;  %v2673_v47 = vmul.u32.u64.high %v932_v28, %v931_v48, %v2672_v4  ;;  %v785_v12 = vshrl.u32 %v784_v43, 23 }
 0x147   :  { %v647_v35 = vsub.s32 32, %v646_v53  ;;  %v651_v62 = vsub.s32 4294967266, %v646_v53  ;;  %vm773_vm10 = vcmp.eq.s32.totalorder %v2631_v16, 0  ;;  %vm2681_vm11 = vcmp.le.f32.partialorder %v575_v25, 0.7853982 }
 0x148   :  { %v662_v59 = vsel %vm577_vm4, %v661_v63, %v2629_v45  ;;  %v1871_v1 = vadd.s32 4294967169, %v785_v12  ;;  %v648_v51 = vshll.u32 %v2648_v0, %v646_v53  ;;  %v942_v50 = vadd.s32 1, %v2669_v7 }
 0x149   :  { %v649_v27 = vshrl.u32 %v631_v46, %v647_v35  ;;  %v652_v49 = vadd.s32 127, %v651_v62  ;;  %v939_v32 = vmul.u32 %v932_v28, %v923_v42  ;;  %vm941_vm12 = vc.u32 %v2673_v47, %v2668_v39 }
 0x14a   :  { %v788_v25 = vand.u32 8388607, %v781_v57  ;;  %v791_v55 = vadd.s32 1, %v1871_v1  ;;  %vm776_vm13 = vcmp.eq.s32.totalorder %v2631_v16, 2  ;;  %v943_v0 = vsel %vm941_vm12, %v942_v50, %v2669_v7 }
 0x14b   :  { %v2002_v56 = vpop.eup %2001  ;;  %v650_v45 = vor.u32 %v649_v27, %v648_v51  ;;  %v653_v11 = vshll.u32 %v652_v49, 23  ;;  %v944_v58 = vadd.s32 %v943_v0, %v939_v32  ;;  %v134_v14 = vmul.f32 %v2626_v40, %v106_v52 }
 0x14c   :  { %v2004_v37 = vpop.eup %2003  ;;  %v777_v60 = vxor.u32 2147483648, %v2002_v56  ;;  %vm792_vm14 = vcmp.gt.s32.totalorder %v791_v55, 0  ;;  %v664_v61 = vsel %vm2681_vm11, 0, %v662_v59  ;;  %v789_v21 = vor.u32 8388608, %v788_v25 }
 0x14d   :  { %v774_v28 = vxor.u32 2147483648, %v2004_v37  ;;  %v654_v5 = vor.u32 4788187, %v653_v11  ;;  %v793_v63 = vsel %vm792_vm14, %v791_v55, 0  ;;  %v945_v2 = vadd.s32 536870912, %v944_v58 }
 0x14e   :  { %v778_v6 = vsel %vm776_vm13, %v777_v60, %v2004_v37  ;;  %v795_v24 = vand.u32 31, %v793_v63  ;;  %vm772_vm15 = vcmp.lt.s32.totalorder %v2631_v16, 2  ;;  %v657_v41 = vcvt.s32.f32 %v650_v45 }
 0x14f   :  { %v775_v3 = vsel %vm773_vm10, %v2002_v56, %v774_v28  ;;  %v655_v44 = vand.u32 2147483647, %v654_v5  ;;  %vm770_vm0 = vweird.f32 %v2373_v22  ;;  %v2703_v31 = vshrl.u32 %v945_v2, 30 }
 0x150   :  { %v779_v30 = vsel %vm772_vm15, %v775_v3, %v778_v6  ;;  %v796_v10 = vsub.s32 32, %v795_v24  ;;  %v2705_v8 = vand.u32 3, %v664_v61  ;;  %v2708_v43 = vmul.f32 %v2626_v40, %v104_v29 }
 0x151   :  { %v780_v33 = vsel %vm770_vm0, nan, %v779_v30  ;;  %v658_v38 = vmul.f32 %v657_v41, %v655_v44  ;;  %v947_v48 = vshll.u32 %v2703_v31, 30  ;;  %v2712_v7 = vshll.u32 %v789_v21, 8 }
 0x152   :  { %1816 = vst [vmem:[#allocation5 + $0x28] sm:$0xff] %v780_v33  ;;  %v799_v16 = vshrl.u32 %v2103_v13, %v796_v10  ;;  %v2715_v22 = vadd.f32 %v2643_v36, %v134_v14  ;;  %v798_v4 = vshll.u32 %v2102_v9, %v795_v24  ;;  %v802_v12 = vshrl.u32 %v2104_v15, %v796_v10 }
 0x153   :  { %v659_v53 = vxor.u32 2147483648, %v658_v38  ;;  %v805_v46 = vshrl.u32 %v2105_v17, %v796_v10  ;;  %v2720_v35 = vsub.s32 %v944_v58, %v947_v48  ;;  %v801_v62 = vshll.u32 %v2103_v13, %v795_v24 }
 0x154   :  { %v804_v42 = vshll.u32 %v2104_v15, %v795_v24  ;;  %v808_v59 = vshrl.u32 %v2106_v19, %v796_v10  ;;  %v794_v51 = vshrl.u32 %v793_v63, 5  ;;  %v800_v27 = vor.u32 %v799_v16, %v798_v4 }
 0x155   :  { %v660_v1 = vsel %vm577_vm4, %v659_v53, %v658_v38  ;;  %v807_v49 = vshll.u32 %v2105_v17, %v795_v24  ;;  %v950_v52 = vsub.s32 0, %v2720_v35  ;;  %v803_v32 = vor.u32 %v802_v12, %v801_v62 }
 0x156   :  { %v663_v50 = vsel %vm2681_vm11, %v2457_v18, %v660_v1  ;;  %v806_v25 = vor.u32 %v805_v46, %v804_v42  ;;  %v810_v56 = vshll.u32 %v2106_v19, %v795_v24  ;;  %v811_v45 = vshrl.u32 %v2107_v26, %v796_v10 }
 0x157   :  { %2005 = vcosq.f32 %v663_v50  ;;  %v809_v55 = vor.u32 %v808_v59, %v807_v49  ;;  %vm886_vm1 = vcmp.lt.s32.totalorder %v2557_v20, 0  ;;  %v1876_v11 = vmin.u32 %v950_v52, %v2720_v35 }
 0x158   :  { %2007 = vsinq.f32 %v663_v50  ;;  %v970_v0 = vsub.s32 4, %v2703_v31  ;;  %v1093_v34 = vand.u32 2139095040, %v2715_v22  ;;  %v797_v37 = vshrl.u32 %v2102_v9, %v796_v10 }
 0x159   :  { %v812_v60 = vor.u32 %v811_v45, %v810_v56  ;;  %vm813_vm2 = vcmp.lt.s32.totalorder %v794_v51, 1  ;;  %vm814_vm3 = vcmp.lt.s32.totalorder %v794_v51, 2  ;;  %v952_v58 = vclz %v1876_v11 }
 0x15a   :  { %vm815_vm4 = vcmp.lt.s32.totalorder %v794_v51, 3  ;;  %vm816_vm5 = vcmp.lt.s32.totalorder %v794_v51, 4  ;;  %v821_v14 = vsel %vm813_vm2, %v800_v27, %v803_v32  ;;  %v825_v61 = vsel %vm813_vm2, %v803_v32, %v806_v25 }
 0x15b   :  { %v818_v28 = vsel %vm816_vm5, %v806_v25, 2102212464  ;;  %v822_v5 = vsel %vm816_vm5, %v809_v55, 920167782  ;;  %v826_v63 = vsel %vm816_vm5, %v812_v60, 1326507024  ;;  %v817_v2 = vsel %vm813_vm2, %v797_v37, %v800_v27 }
 0x15c   :  { %vm670_vm6 = vcmp.eq.s32.totalorder %v2705_v8, 0  ;;  %v1877_v6 = vadd.s32 4294967294, %v952_v58  ;;  %v823_v21 = vsel %vm815_vm4, %v806_v25, %v822_v5  ;;  %v827_v24 = vsel %vm815_vm4, %v809_v55, %v826_v63 }
 0x15d   :  { %v819_v29 = vsel %vm815_vm4, %v803_v32, %v818_v28  ;;  %v824_v3 = vsel %vm814_vm3, %v821_v14, %v823_v21  ;;  %v828_v44 = vsel %vm814_vm3, %v825_v61, %v827_v24  ;;  %v1094_v41 = vshrl.u32 %v1093_v34, 23 }
 0x15e   :  { %vm667_vm7 = vweird.f32 %v2457_v18  ;;  %vm2745_vm8 = vcmp.le.f32.partialorder %v884_v23, 0.7853982  ;;  %vm1878_vm9 = vcmp.lt.s32.totalorder %v1877_v6, 0  ;;  %v1090_v38 = vand.u32 2147483647, %v2715_v22 }
 0x15f   :  { %v2750_v10 = vmul.u32.u64.low %v2712_v7, %v828_v44  ;;  %v2751_v33 = vmul.u32.u64.high %v2712_v7, %v828_v44, %v2750_v10  ;;  %v955_v48 = vsel %vm1878_vm9, 0, %v1877_v6  ;;  %v1883_v4 = vadd.s32 4294967169, %v1094_v41 }
 0x160   :  { %v2755_v16 = vmul.u32.u64.low %v2712_v7, %v824_v3  ;;  %v2756_v53 = vmul.u32.u64.high %v2712_v7, %v824_v3, %v2755_v16  ;;  %v940_v23 = vadd.s32 %v2668_v39, %v2673_v47  ;;  %v956_v12 = vsub.s32 32, %v955_v48 }
 0x161   :  { %v960_v46 = vsub.s32 4294967266, %v955_v48  ;;  %v820_v62 = vsel %vm814_vm3, %v817_v2, %v819_v29  ;;  %v2006_v42 = vpop.eup %2005  ;;  %vm673_vm10 = vcmp.eq.s32.totalorder %v2705_v8, 2  ;;  %v957_v59 = vshll.u32 %v2720_v35, %v955_v48 }
 0x162   :  { %v971_v1 = vsel %vm886_vm1, %v970_v0, %v2703_v31  ;;  %v1100_v27 = vadd.s32 1, %v1883_v4  ;;  %v2008_v49 = vpop.eup %2007  ;;  %v674_v50 = vxor.u32 2147483648, %v2006_v42  ;;  %v958_v52 = vshrl.u32 %v940_v23, %v956_v12 }
 0x163   :  { %v961_v32 = vadd.s32 127, %v960_v46  ;;  %v1097_v39 = vand.u32 8388607, %v1090_v38  ;;  %v671_v47 = vxor.u32 2147483648, %v2008_v49  ;;  %v836_v51 = vmul.u32 %v2712_v7, %v820_v62 }
 0x164   :  { %vm838_vm11 = vc.u32 %v2751_v33, %v2755_v16  ;;  %v839_v35 = vadd.s32 1, %v2756_v53  ;;  %v675_v25 = vsel %vm673_vm10, %v674_v50, %v2008_v49  ;;  %v959_v55 = vor.u32 %v958_v52, %v957_v59 }
 0x165   :  { %v962_v56 = vshll.u32 %v961_v32, 23  ;;  %vm1101_vm12 = vcmp.gt.s32.totalorder %v1100_v27, 0  ;;  %vm669_vm13 = vcmp.lt.s32.totalorder %v2705_v8, 2  ;;  %v672_v31 = vsel %vm670_vm6, %v2006_v42, %v671_v47 }
 0x166   :  { %v840_v45 = vsel %vm838_vm11, %v839_v35, %v2756_v53  ;;  %v1102_v11 = vsel %vm1101_vm12, %v1100_v27, 0  ;;  %v676_v0 = vsel %vm669_vm13, %v672_v31, %v675_v25  ;;  %v1098_v37 = vor.u32 8388608, %v1097_v39 }
 0x167   :  { %v963_v34 = vor.u32 4788187, %v962_v56  ;;  %v841_v7 = vadd.s32 %v840_v45, %v836_v51  ;;  %v677_v60 = vsel %vm667_vm7, nan, %v676_v0  ;;  %v973_v58 = vsel %vm2745_vm8, 0, %v971_v1 }
 0x168   :  { %v1104_v14 = vand.u32 31, %v1102_v11  ;;  %1815 = vst [vmem:[#allocation5 + $0x20] sm:$0xff] %v677_v60  ;;  %v966_v5 = vcvt.s32.f32 %v959_v55  ;;  %v2783_v63 = vadd.f32 %v2643_v36, %v2708_v43  ;;  %v2785_v2 = vand.u32 3, %v973_v58 }
 0x169   :  { %v964_v28 = vand.u32 2147483647, %v963_v34  ;;  %v842_v61 = vadd.s32 536870912, %v841_v7  ;;  %v2789_v18 = vshll.u32 %v1098_v37, 8  ;;  %v1103_v24 = vshrl.u32 %v1102_v11, 5 }
 0x16a   :  { %v1105_v8 = vsub.s32 32, %v1104_v14  ;;  %v1107_v43 = vshll.u32 %v2102_v9, %v1104_v14  ;;  %v1110_v53 = vshll.u32 %v2103_v13, %v1104_v14  ;;  %v1113_v4 = vshll.u32 %v2104_v15, %v1104_v14 }
 0x16b   :  { %v967_v6 = vmul.f32 %v966_v5, %v964_v28  ;;  %v2787_v21 = vshrl.u32 %v842_v61, 30  ;;  %v1116_v23 = vshll.u32 %v2105_v17, %v1104_v14  ;;  %v1119_v59 = vshll.u32 %v2106_v19, %v1104_v14 }
 0x16c   :  { %v1108_v29 = vshrl.u32 %v2103_v13, %v1105_v8  ;;  %v1111_v3 = vshrl.u32 %v2104_v15, %v1105_v8  ;;  %v1114_v44 = vshrl.u32 %v2105_v17, %v1105_v8  ;;  %v1117_v48 = vshrl.u32 %v2106_v19, %v1105_v8 }
 0x16d   :  { %v968_v41 = vxor.u32 2147483648, %v967_v6  ;;  %v844_v10 = vshll.u32 %v2787_v21, 30  ;;  %v1120_v12 = vshrl.u32 %v2107_v26, %v1105_v8  ;;  %v1106_v32 = vshrl.u32 %v2102_v9, %v1105_v8 }
 0x16e   :  { %v1109_v42 = vor.u32 %v1108_v29, %v1107_v43  ;;  %v1112_v27 = vor.u32 %v1111_v3, %v1110_v53  ;;  %v1115_v49 = vor.u32 %v1114_v44, %v1113_v4  ;;  %v1118_v50 = vor.u32 %v1117_v48, %v1116_v23 }
 0x16f   :  { %v969_v46 = vsel %vm886_vm1, %v968_v41, %v967_v6  ;;  %v2803_v62 = vsub.s32 %v841_v7, %v844_v10  ;;  %v1121_v39 = vor.u32 %v1120_v12, %v1119_v59  ;;  %vm1122_vm14 = vcmp.lt.s32.totalorder %v1103_v24, 1 }
 0x170   :  { %v972_v1 = vsel %vm2745_vm8, %v2557_v20, %v969_v46  ;;  %vm1123_vm15 = vcmp.lt.s32.totalorder %v1103_v24, 2  ;;  %v990_v47 = vand.u32 2139095040, %v2783_v63  ;;  %vm1124_vm0 = vcmp.lt.s32.totalorder %v1103_v24, 3 }
 0x171   :  { %2009 = vcosq.f32 %v972_v1  ;;  %v847_v52 = vsub.s32 0, %v2803_v62  ;;  %vm1125_vm1 = vcmp.lt.s32.totalorder %v1103_v24, 4  ;;  %v1126_v30 = vsel %vm1122_vm14, %v1106_v32, %v1109_v42 }
 0x172   :  { %2011 = vsinq.f32 %v972_v1  ;;  %v1127_v35 = vsel %vm1125_vm1, %v1115_v49, 2102212464  ;;  %v1130_v25 = vsel %vm1122_vm14, %v1109_v42, %v1112_v27  ;;  %v1131_v55 = vsel %vm1125_vm1, %v1118_v50, 920167782 }
 0x173   :  { %v1872_v51 = vmin.u32 %v847_v52, %v2803_v62  ;;  %v1134_v56 = vsel %vm1122_vm14, %v1112_v27, %v1115_v49  ;;  %v1128_v45 = vsel %vm1124_vm0, %v1112_v27, %v1127_v35  ;;  %v1132_v11 = vsel %vm1124_vm0, %v1115_v49, %v1131_v55  ;;  %v110_v49 = vpop.xlane.xlu1 %109 }
 0x174   :  { %v1135_v0 = vsel %vm1125_vm1, %v1121_v39, 1326507024  ;;  %v1133_v34 = vsel %vm1123_vm15, %v1130_v25, %v1132_v11  ;;  %v991_v37 = vshrl.u32 %v990_v47, 23  ;;  %vm783_vm2 = vcmp.lt.s32.totalorder %v2646_v54, 0  ;;  %v108_v39 = vpop.xlane.xlu0 %107 }
 0x175   :  { %v849_v31 = vclz %v1872_v51  ;;  %v1136_v7 = vsel %vm1124_vm0, %v1118_v50, %v1135_v0  ;;  %v2817_v14 = vmul.u32.u64.low %v2789_v18, %v1133_v34  ;;  %v2818_v28 = vmul.u32.u64.high %v2789_v18, %v1133_v34, %v2817_v14 }
 0x176   :  { %v1137_v58 = vsel %vm1123_vm15, %v1134_v56, %v1136_v7  ;;  %vm976_vm3 = vweird.f32 %v2557_v20  ;;  %v1129_v5 = vsel %vm1123_vm15, %v1126_v30, %v1128_v45  ;;  %v1879_v6 = vadd.s32 4294967169, %v991_v37 }
 0x177   :  { %v1873_v60 = vadd.s32 4294967294, %v849_v31  ;;  %v2824_v61 = vmul.u32.u64.low %v2789_v18, %v1137_v58  ;;  %v2825_v8 = vmul.u32.u64.high %v2789_v18, %v1137_v58, %v2824_v61  ;;  %vm978_vm4 = vcmp.lt.s32.totalorder %v2785_v2, 2 }
 0x178   :  { %vm982_vm5 = vcmp.eq.s32.totalorder %v2785_v2, 2  ;;  %v987_v29 = vand.u32 2147483647, %v2783_v63  ;;  %v837_v3 = vadd.s32 %v2755_v16, %v2751_v33  ;;  %v867_v41 = vsub.s32 4, %v2787_v21 }
 0x179   :  { %vm1874_vm6 = vcmp.lt.s32.totalorder %v1873_v60, 0  ;;  %v997_v24 = vadd.s32 1, %v1879_v6  ;;  %v1145_v53 = vmul.u32 %v2789_v18, %v1129_v5  ;;  %v1148_v4 = vadd.s32 1, %v2818_v28 }
 0x17a   :  { %v852_v44 = vsel %vm1874_vm6, 0, %v1873_v60  ;;  %vm1147_vm7 = vc.u32 %v2825_v8, %v2817_v14  ;;  %vm979_vm9 = vcmp.eq.s32.totalorder %v2785_v2, 0  ;;  %v994_v32 = vand.u32 8388607, %v987_v29 }
 0x17b   :  { %v2010_v10 = vpop.eup %2009  ;;  %v853_v43 = vsub.s32 32, %v852_v44  ;;  %v857_v48 = vsub.s32 4294967266, %v852_v44  ;;  %v854_v46 = vshll.u32 %v2803_v62, %v852_v44  ;;  %vm998_vm8 = vcmp.gt.s32.totalorder %v997_v24, 0 }
 0x17c   :  { %v2012_v23 = vpop.eup %2011  ;;  %v983_v12 = vxor.u32 2147483648, %v2010_v10  ;;  %v1149_v59 = vsel %vm1147_vm7, %v1148_v4, %v2818_v28  ;;  %v999_v27 = vsel %vm998_vm8, %v997_v24, 0  ;;  %v868_v51 = vsel %vm783_vm2, %v867_v41, %v2787_v21 }
 0x17d   :  { %v980_v33 = vxor.u32 2147483648, %v2012_v23  ;;  %v855_v16 = vshrl.u32 %v837_v3, %v853_v43  ;;  %v858_v42 = vadd.s32 127, %v857_v48  ;;  %v1150_v1 = vadd.s32 %v1149_v59, %v1145_v53 }
 0x17e   :  { %v984_v18 = vsel %vm982_vm5, %v983_v12, %v2012_v23  ;;  %v1001_v35 = vand.u32 31, %v999_v27  ;;  %v136_v56 = vmul.f32 %v2626_v40, %v110_v49  ;;  %vm2854_vm10 = vcmp.le.f32.partialorder %v781_v57, 0.7853982 }
 0x17f   :  { %v981_v50 = vsel %vm979_vm9, %v2010_v10, %v980_v33  ;;  %v856_v52 = vor.u32 %v855_v16, %v854_v46  ;;  %v859_v62 = vshll.u32 %v858_v42, 23  ;;  %v1151_v30 = vadd.s32 536870912, %v1150_v1 }
 0x180   :  { %v985_v47 = vsel %vm978_vm4, %v981_v50, %v984_v18  ;;  %v1002_v45 = vsub.s32 32, %v1001_v35  ;;  %v2861_v21 = vmul.f32 %v2626_v40, %v108_v39  ;;  %v870_v20 = vsel %vm2854_vm10, 0, %v868_v51 }
 0x181   :  { %v986_v25 = vsel %vm976_vm3, nan, %v985_v47  ;;  %v860_v55 = vor.u32 4788187, %v859_v62  ;;  %v2858_v2 = vshrl.u32 %v1151_v30, 30  ;;  %v863_v0 = vcvt.s32.f32 %v856_v52 }
 0x182   :  { %1818 = vst [vmem:[#allocation5 + $0x38] sm:$0xff] %v986_v25  ;;  %v995_v34 = vor.u32 8388608, %v994_v32  ;;  %v2866_v37 = vshrl.u32 %v999_v27, 5  ;;  %v1004_v57 = vshll.u32 %v2102_v9, %v1001_v35  ;;  %v1005_v60 = vshrl.u32 %v2103_v13, %v1002_v45 }
 0x183   :  { %v861_v11 = vand.u32 2147483647, %v860_v55  ;;  %v1153_v7 = vshll.u32 %v2858_v2, 30  ;;  %v1008_v28 = vshrl.u32 %v2104_v15, %v1002_v45  ;;  %v1011_v40 = vshrl.u32 %v2105_v17, %v1002_v45 }
 0x184   :  { %v1014_v5 = vshrl.u32 %v2106_v19, %v1002_v45  ;;  %v1007_v6 = vshll.u32 %v2103_v13, %v1001_v35  ;;  %v1010_v3 = vshll.u32 %v2104_v15, %v1001_v35  ;;  %v1017_v44 = vshrl.u32 %v2107_v26, %v1002_v45 }
 0x185   :  { %v864_v58 = vmul.f32 %v863_v0, %v861_v11  ;;  %v2873_v61 = vsub.s32 %v1150_v1, %v1153_v7  ;;  %v2878_v24 = vand.u32 3, %v870_v20  ;;  %v1013_v10 = vshll.u32 %v2105_v17, %v1001_v35 }
 0x186   :  { %v1016_v43 = vshll.u32 %v2106_v19, %v1001_v35  ;;  %v1006_v53 = vor.u32 %v1005_v60, %v1004_v57  ;;  %v1009_v4 = vor.u32 %v1008_v28, %v1007_v6  ;;  %v1012_v23 = vor.u32 %v1011_v40, %v1010_v3 }
 0x187   :  { %v865_v41 = vxor.u32 2147483648, %v864_v58  ;;  %v1156_v48 = vsub.s32 0, %v2873_v61  ;;  %v1015_v46 = vor.u32 %v1014_v5, %v1013_v10  ;;  %v2886_v16 = vadd.f32 %v2643_v36, %v136_v56 }
 0x188   :  { %v1018_v33 = vor.u32 %v1017_v44, %v1016_v43  ;;  %vm1092_vm11 = vcmp.lt.s32.totalorder %v2715_v22, 0  ;;  %vm1019_vm12 = vcmp.lt.s32.totalorder %v2866_v37, 1  ;;  %v1035_v18 = vshll.u32 %v995_v34, 8 }
 0x189   :  { %v866_v12 = vsel %vm783_vm2, %v865_v41, %v864_v58  ;;  %v1884_v59 = vmin.u32 %v1156_v48, %v2873_v61  ;;  %v1176_v1 = vsub.s32 4, %v2858_v2  ;;  %v1003_v27 = vshrl.u32 %v2102_v9, %v1002_v45 }
 0x18a   :  { %v869_v42 = vsel %vm2854_vm10, %v2646_v54, %v866_v12  ;;  %vm1022_vm13 = vcmp.lt.s32.totalorder %v2866_v37, 4  ;;  %v1027_v52 = vsel %vm1019_vm12, %v1006_v53, %v1009_v4  ;;  %vm1021_vm14 = vcmp.lt.s32.totalorder %v2866_v37, 3 }
 0x18b   :  { %2013 = vcosq.f32 %v869_v42  ;;  %v1158_v49 = vclz %v1884_v59  ;;  %v1024_v50 = vsel %vm1022_vm13, %v1012_v23, 2102212464  ;;  %v1028_v62 = vsel %vm1022_vm13, %v1015_v46, 920167782 }
 0x18c   :  { %2015 = vsinq.f32 %v869_v42  ;;  %v1031_v32 = vsel %vm1019_vm12, %v1009_v4, %v1012_v23  ;;  %v1032_v39 = vsel %vm1022_vm13, %v1018_v33, 1326507024  ;;  %vm2904_vm15 = vcmp.le.f32.partialorder %v1090_v38, 0.7853982 }
 0x18d   :  { %v1885_v51 = vadd.s32 4294967294, %v1158_v49  ;;  %vm1020_vm0 = vcmp.lt.s32.totalorder %v2866_v37, 2  ;;  %v1029_v30 = vsel %vm1021_vm14, %v1012_v23, %v1028_v62  ;;  %v1033_v35 = vsel %vm1021_vm14, %v1015_v46, %v1032_v39 }
 0x18e   :  { %v1023_v25 = vsel %vm1019_vm12, %v1003_v27, %v1006_v53  ;;  %v1025_v55 = vsel %vm1021_vm14, %v1009_v4, %v1024_v50  ;;  %v1030_v56 = vsel %vm1020_vm0, %v1027_v52, %v1029_v30  ;;  %v1034_v31 = vsel %vm1020_vm0, %v1031_v32, %v1033_v35 }
 0x18f   :  { %vm1886_vm1 = vcmp.lt.s32.totalorder %v1885_v51, 0  ;;  %v2915_v38 = vmul.u32.u64.low %v1035_v18, %v1034_v31  ;;  %v2916_v45 = vmul.u32.u64.high %v1035_v18, %v1034_v31, %v2915_v38  ;;  %v1299_v11 = vand.u32 2139095040, %v2886_v16 }
 0x190   :  { %vm875_vm2 = vcmp.lt.s32.totalorder %v2878_v24, 2  ;;  %v1161_v0 = vsel %vm1886_vm1, 0, %v1885_v51  ;;  %v2920_v20 = vmul.u32.u64.low %v1035_v18, %v1030_v56  ;;  %v2921_v34 = vmul.u32.u64.high %v1035_v18, %v1030_v56, %v2920_v20 }
 0x191   :  { %vm873_vm3 = vweird.f32 %v2646_v54  ;;  %v1146_v7 = vadd.s32 %v2817_v14, %v2825_v8  ;;  %v1162_v57 = vsub.s32 32, %v1161_v0  ;;  %v1166_v60 = vsub.s32 4294967266, %v1161_v0 }
 0x192   :  { %v1300_v58 = vshrl.u32 %v1299_v11, 23  ;;  %vm876_vm4 = vcmp.eq.s32.totalorder %v2878_v24, 0  ;;  %v1177_v28 = vsel %vm1092_vm11, %v1176_v1, %v2858_v2  ;;  %v1026_v40 = vsel %vm1020_vm0, %v1023_v25, %v1025_v55 }
 0x193   :  { %v1296_v5 = vand.u32 2147483647, %v2886_v16  ;;  %v1163_v6 = vshll.u32 %v2873_v61, %v1161_v0  ;;  %v1164_v3 = vshrl.u32 %v1146_v7, %v1162_v57  ;;  %v1167_v44 = vadd.s32 127, %v1166_v60 }
 0x194   :  { %vm1044_vm5 = vc.u32 %v2916_v45, %v2920_v20  ;;  %vm879_vm6 = vcmp.eq.s32.totalorder %v2878_v24, 2  ;;  %v1045_v8 = vadd.s32 1, %v2921_v34  ;;  %v1891_v41 = vadd.s32 4294967169, %v1300_v58 }
 0x195   :  { %v2014_v14 = vpop.eup %2013  ;;  %v2941_v2 = vadd.f32 %v2643_v36, %v2861_v21  ;;  %v1165_v43 = vor.u32 %v1164_v3, %v1163_v6  ;;  %v1168_v48 = vshll.u32 %v1167_v44, 23  ;;  %v1042_v61 = vmul.u32 %v1035_v18, %v1026_v40 }
 0x196   :  { %v2016_v37 = vpop.eup %2015  ;;  %v880_v10 = vxor.u32 2147483648, %v2014_v14  ;;  %v1179_v4 = vsel %vm2904_vm15, 0, %v1177_v28  ;;  %v1046_v23 = vsel %vm1044_vm5, %v1045_v8, %v2921_v34  ;;  %v1306_v12 = vadd.s32 1, %v1891_v41 }
 0x197   :  { %v877_v53 = vxor.u32 2147483648, %v2016_v37  ;;  %v1169_v33 = vor.u32 4788187, %v1168_v48  ;;  %v1047_v42 = vadd.s32 %v1046_v23, %v1042_v61  ;;  %v1303_v59 = vand.u32 8388607, %v1296_v5 }
 0x198   :  { %v881_v46 = vsel %vm879_vm6, %v880_v10, %v2016_v37  ;;  %v1172_v21 = vcvt.s32.f32 %v1165_v43  ;;  %vm1307_vm7 = vcmp.gt.s32.totalorder %v1306_v12, 0  ;;  %v1196_v18 = vand.u32 2139095040, %v2941_v2 }
 0x199   :  { %v878_v36 = vsel %vm876_vm4, %v2014_v14, %v877_v53  ;;  %v1170_v27 = vand.u32 2147483647, %v1169_v33  ;;  %v1048_v49 = vadd.s32 536870912, %v1047_v42  ;;  %v1308_v50 = vsel %vm1307_vm7, %v1306_v12, 0 }
 0x19a   :  { %v882_v1 = vsel %vm875_vm2, %v878_v36, %v881_v46  ;;  %v1310_v62 = vand.u32 31, %v1308_v50  ;;  %v2957_v51 = vand.u32 3, %v1179_v4  ;;  %v1304_v30 = vor.u32 8388608, %v1303_v59 }
 0x19b   :  { %v883_v52 = vsel %vm873_vm3, nan, %v882_v1  ;;  %v1173_v32 = vmul.f32 %v1172_v21, %v1170_v27  ;;  %v2955_v39 = vshrl.u32 %v1048_v49, 30  ;;  %v1197_v56 = vshrl.u32 %v1196_v18, 23 }
 0x19c   :  { %1817 = vst [vmem:[#allocation5 + $0x30] sm:$0xff] %v883_v52  ;;  %v1311_v35 = vsub.s32 32, %v1310_v62  ;;  %v1313_v24 = vshll.u32 %v2102_v9, %v1310_v62  ;;  %v1316_v54 = vshll.u32 %v2103_v13, %v1310_v62  ;;  %v1319_v7 = vshll.u32 %v2104_v15, %v1310_v62 }
 0x19d   :  { %v1174_v25 = vxor.u32 2147483648, %v1173_v32  ;;  %v1050_v55 = vshll.u32 %v2955_v39, 30  ;;  %v1309_v58 = vshrl.u32 %v1308_v50, 5  ;;  %v1322_v40 = vshll.u32 %v2105_v17, %v1310_v62 }
 0x19e   :  { %v1314_v31 = vshrl.u32 %v2103_v13, %v1311_v35  ;;  %v1317_v38 = vshrl.u32 %v2104_v15, %v1311_v35  ;;  %v1320_v11 = vshrl.u32 %v2105_v17, %v1311_v35  ;;  %v1323_v57 = vshrl.u32 %v2106_v19, %v1311_v35 }
 0x19f   :  { %v1175_v0 = vsel %vm1092_vm11, %v1174_v25, %v1173_v32  ;;  %v2967_v34 = vsub.s32 %v1047_v42, %v1050_v55  ;;  %v1325_v8 = vshll.u32 %v2106_v19, %v1310_v62  ;;  %v1326_v41 = vshrl.u32 %v2107_v26, %v1311_v35 }
 0x1a0   :  { %v1178_v60 = vsel %vm2904_vm15, %v2715_v22, %v1175_v0  ;;  %v1315_v28 = vor.u32 %v1314_v31, %v1313_v24  ;;  %v1318_v3 = vor.u32 %v1317_v38, %v1316_v54  ;;  %v1321_v44 = vor.u32 %v1320_v11, %v1319_v7 }
 0x1a1   :  { %2017 = vcosq.f32 %v1178_v60  ;;  %v1053_v6 = vsub.s32 0, %v2967_v34  ;;  %v1324_v14 = vor.u32 %v1323_v57, %v1322_v40  ;;  %v1043_v37 = vadd.s32 %v2920_v20, %v2916_v45 }
 0x1a2   :  { %2019 = vsinq.f32 %v1178_v60  ;;  %v2981_v10 = vshll.u32 %v1304_v30, 8  ;;  %v1193_v43 = vand.u32 2147483647, %v2941_v2  ;;  %v1312_v48 = vshrl.u32 %v2102_v9, %v1311_v35 }
 0x1a3   :  { %v1880_v47 = vmin.u32 %v1053_v6, %v2967_v34  ;;  %v1327_v61 = vor.u32 %v1326_v41, %v1325_v8  ;;  %vm1328_vm8 = vcmp.lt.s32.totalorder %v1309_v58, 1  ;;  %v1887_v53 = vadd.s32 4294967169, %v1197_v56 }
 0x1a4   :  { %vm1188_vm9 = vcmp.eq.s32.totalorder %v2957_v51, 2  ;;  %vm1330_vm10 = vcmp.lt.s32.totalorder %v1309_v58, 3  ;;  %vm1331_vm11 = vcmp.lt.s32.totalorder %v1309_v58, 4  ;;  %v1336_v23 = vsel %vm1328_vm8, %v1315_v28, %v1318_v3 }
 0x1a5   :  { %v1055_v4 = vclz %v1880_v47  ;;  %vm1185_vm12 = vcmp.eq.s32.totalorder %v2957_v51, 0  ;;  %v1333_v45 = vsel %vm1331_vm11, %v1321_v44, 2102212464  ;;  %v1337_v20 = vsel %vm1331_vm11, %v1324_v14, 920167782 }
 0x1a6   :  { %v1340_v12 = vsel %vm1328_vm8, %v1318_v3, %v1321_v44  ;;  %v1341_v46 = vsel %vm1331_vm11, %v1327_v61, 1326507024  ;;  %vm1184_vm13 = vcmp.lt.s32.totalorder %v2957_v51, 2  ;;  %vm1329_vm14 = vcmp.lt.s32.totalorder %v1309_v58, 2 }
 0x1a7   :  { %v1881_v33 = vadd.s32 4294967294, %v1055_v4  ;;  %v1338_v42 = vsel %vm1330_vm10, %v1321_v44, %v1337_v20  ;;  %v1342_v59 = vsel %vm1330_vm10, %v1324_v14, %v1341_v46  ;;  %vm1182_vm15 = vweird.f32 %v2715_v22 }
 0x1a8   :  { %v1332_v36 = vsel %vm1328_vm8, %v1312_v48, %v1315_v28  ;;  %v1339_v21 = vsel %vm1329_vm14, %v1336_v23, %v1338_v42  ;;  %v1343_v18 = vsel %vm1329_vm14, %v1340_v12, %v1342_v59  ;;  %v1203_v1 = vadd.s32 1, %v1887_v53 }
 0x1a9   :  { %vm1882_vm0 = vcmp.lt.s32.totalorder %v1881_v33, 0  ;;  %v1334_v27 = vsel %vm1330_vm10, %v1318_v3, %v1333_v45  ;;  %v2998_v49 = vmul.u32.u64.low %v2981_v10, %v1343_v18  ;;  %v2999_v50 = vmul.u32.u64.high %v2981_v10, %v1343_v18, %v2998_v49  ;;  %v114_v45 = vpop.xlane.xlu1 %113 }
 0x1aa   :  { %v1058_v52 = vsel %vm1882_vm0, 0, %v1881_v33  ;;  %v3002_v62 = vmul.u32.u64.low %v2981_v10, %v1339_v21  ;;  %v3003_v32 = vmul.u32.u64.high %v2981_v10, %v1339_v21, %v3002_v62  ;;  %vm1204_vm1 = vcmp.gt.s32.totalorder %v1203_v1, 0 }
 0x1ab   :  { %v2018_v30 = vpop.eup %2017  ;;  %v1059_v35 = vsub.s32 32, %v1058_v52  ;;  %v1063_v25 = vsub.s32 4294967266, %v1058_v52  ;;  %v3008_v55 = vand.u32 8388607, %v1193_v43  ;;  %v1205_v24 = vsel %vm1204_vm1, %v1203_v1, 0 }
 0x1ac   :  { %v2020_v56 = vpop.eup %2019  ;;  %v1189_v31 = vxor.u32 2147483648, %v2018_v30  ;;  %vm989_vm2 = vcmp.lt.s32.totalorder %v2783_v63, 0  ;;  %v1073_v54 = vsub.s32 4, %v2955_v39  ;;  %v1335_v38 = vsel %vm1329_vm14, %v1332_v36, %v1334_v27  ;;  %v3050_v27 = vld [vmem:[%s3420_s1] ss:$0 sm:$0xff] }
 0x1ad   :  { %v1207_v11 = vand.u32 31, %v1205_v24  ;;  %v1186_v0 = vxor.u32 2147483648, %v2020_v56  ;;  %v1060_v7 = vshll.u32 %v2967_v34, %v1058_v52  ;;  %v1061_v57 = vshrl.u32 %v1043_v37, %v1059_v35 }
 0x1ae   :  { %v1064_v60 = vadd.s32 127, %v1063_v25  ;;  %v1190_v28 = vsel %vm1188_vm9, %v1189_v31, %v2020_v56  ;;  %vm1353_vm3 = vc.u32 %v2999_v50, %v3002_v62  ;;  %v1354_v40 = vadd.s32 1, %v3003_v32 }
 0x1af   :  { %v1208_v6 = vsub.s32 32, %v1207_v11  ;;  %v1187_v3 = vsel %vm1185_vm12, %v2018_v30, %v1186_v0  ;;  %vm3023_vm4 = vcmp.le.f32.partialorder %v987_v29, 0.7853982  ;;  %v1062_v34 = vor.u32 %v1061_v57, %v1060_v7 }
 0x1b0   :  { %v1065_v44 = vshll.u32 %v1064_v60, 23  ;;  %v1351_v14 = vmul.u32 %v2981_v10, %v1335_v38  ;;  %v1191_v8 = vsel %vm1184_vm13, %v1187_v3, %v1190_v28  ;;  %v1355_v41 = vsel %vm1353_vm3, %v1354_v40, %v3003_v32 }
 0x1b1   :  { %v1210_v37 = vshll.u32 %v2102_v9, %v1207_v11  ;;  %v1211_v47 = vshrl.u32 %v2103_v13, %v1208_v6  ;;  %v1192_v48 = vsel %vm1182_vm15, nan, %v1191_v8  ;;  %v3035_v53 = vshrl.u32 %v1205_v24, 5 }
 0x1b2   :  { %v1066_v29 = vor.u32 4788187, %v1065_v44  ;;  %v1356_v61 = vadd.s32 %v1355_v41, %v1351_v14  ;;  %1820 = vst [vmem:[#allocation5 + $0x48] sm:$0xff] %v1192_v48  ;;  %v1069_v4 = vcvt.s32.f32 %v1062_v34  ;;  %v1213_v10 = vshll.u32 %v2103_v13, %v1207_v11 }
 0x1b3   :  { %v1212_v23 = vor.u32 %v1211_v47, %v1210_v37  ;;  %v1214_v51 = vshrl.u32 %v2104_v15, %v1208_v6  ;;  %v1216_v46 = vshll.u32 %v2104_v15, %v1207_v11  ;;  %v1217_v33 = vshrl.u32 %v2105_v17, %v1208_v6 }
 0x1b4   :  { %v1067_v20 = vand.u32 2147483647, %v1066_v29  ;;  %v1357_v12 = vadd.s32 536870912, %v1356_v61  ;;  %v1219_v42 = vshll.u32 %v2105_v17, %v1207_v11  ;;  %v1220_v59 = vshrl.u32 %v2106_v19, %v1208_v6 }
 0x1b5   :  { %v1215_v22 = vor.u32 %v1214_v51, %v1213_v10  ;;  %v1223_v36 = vshrl.u32 %v2107_v26, %v1208_v6  ;;  %v1074_v18 = vsel %vm989_vm2, %v1073_v54, %v2955_v39  ;;  %v138_v49 = vmul.f32 %v3050_v27, %v114_v45 }
 0x1b6   :  { %v1070_v21 = vmul.f32 %v1069_v4, %v1067_v20  ;;  %v1358_v1 = vshrl.u32 %v1357_v12, 30  ;;  %v1201_v52 = vor.u32 8388608, %v3008_v55  ;;  %v1218_v32 = vor.u32 %v1217_v33, %v1216_v46 }
 0x1b7   :  { %v1221_v30 = vor.u32 %v1220_v59, %v1219_v42  ;;  %v1222_v35 = vshll.u32 %v2106_v19, %v1207_v11  ;;  %vm1225_vm5 = vcmp.lt.s32.totalorder %v3035_v53, 1  ;;  %vm1228_vm6 = vcmp.lt.s32.totalorder %v3035_v53, 4  ;;  %v3071_v11 = vld [vmem:[%s3421_s2] ss:$0 sm:$0xff]  ;;  %s2108_s2 = smov [#allocation5]  }
 0x1b8   :  { %v1071_v25 = vxor.u32 2147483648, %v1070_v21  ;;  %v1359_v24 = vshll.u32 %v1358_v1, 30  ;;  %v1076_v39 = vsel %vm3023_vm4, 0, %v1074_v18  ;;  %v1233_v31 = vsel %vm1225_vm5, %v1212_v23, %v1215_v22  ;;  %s1832_s8 = sshll.u32 %s2108_s2, 4  ;;  %s1833_s8 = int_to_ptr.vmem [resolvable:$true] %s1832_s8 }
 0x1b9   :  { %v1224_v56 = vor.u32 %v1223_v36, %v1222_v35  ;;  %v1234_v55 = vsel %vm1228_vm6, %v1221_v30, 920167782  ;;  %vm1227_vm7 = vcmp.lt.s32.totalorder %v3035_v53, 3  ;;  %v3074_v0 = vadd.f32 %v3071_v11, %v138_v49  ;;  %s2075_s9 = scalar_lea.vmem %s1833_s8, 2048  ;;  %p2080_p9 = scmp.lt.s32.totalorder %s1833_s8, %s1833_s8 }
 0x1ba   :  { %v1072_v54 = vsel %vm989_vm2, %v1071_v25, %v1070_v21  ;;  %v3065_v38 = vsub.s32 %v1356_v61, %v1359_v24  ;;  %v1209_v57 = vshrl.u32 %v2102_v9, %v1208_v6  ;;  %vm1226_vm8 = vcmp.lt.s32.totalorder %v3035_v53, 2  ;;  %p2076_p8 = scmp.ne.s32.totalorder %s1833_s8, %s2075_s9  ;;  %p2081_p10 = scmp.lt.s32.totalorder %s2075_s9, %s2075_s9 }
 0x1bb   :  { %v1075_v7 = vsel %vm3023_vm4, %v2783_v63, %v1072_v54  ;;  %v1235_v60 = vsel %vm1227_vm7, %v1218_v32, %v1234_v55  ;;  %v1230_v40 = vsel %vm1228_vm6, %v1218_v32, 2102212464  ;;  %v1237_v58 = vsel %vm1225_vm5, %v1215_v22, %v1218_v32  ;;  %v112_v32 = vpop.xlane.xlu0 %111 }
 0x1bc   :  { %2021 = vcosq.f32 %v1075_v7  ;;  %v1362_v28 = vsub.s32 0, %v3065_v38  ;;  %v1236_v3 = vsel %vm1226_vm8, %v1233_v31, %v1235_v60  ;;  %v1238_v6 = vsel %vm1228_vm6, %v1224_v56, 1326507024  ;;  %p2082_p11 = por %p2081_p10, %p2080_p9 }
 0x1bd   :  { %2023 = vsinq.f32 %v1075_v7  ;;  %v1241_v34 = vshll.u32 %v1201_v52, 8  ;;  %v1080_v44 = vand.u32 3, %v1076_v39  ;;  %v1382_v8 = vsub.s32 4, %v1358_v1 }
 0x1be   :  { %v1892_v14 = vmin.u32 %v1362_v28, %v3065_v38  ;;  %v1229_v41 = vsel %vm1225_vm5, %v1209_v57, %v1212_v23  ;;  %v1231_v37 = vsel %vm1227_vm7, %v1215_v22, %v1230_v40  ;;  %v1239_v47 = vsel %vm1227_vm7, %v1221_v30, %v1238_v6  ;;  %p2083_p12 = pnand %p2082_p11, %p2076_p8 }
 0x1bf   :  { %v3099_v48 = vmul.u32.u64.low %v1241_v34, %v1236_v3  ;;  %v3100_v29 = vmul.u32.u64.high %v1241_v34, %v1236_v3, %v3099_v48  ;;  %v1240_v4 = vsel %vm1226_vm8, %v1237_v58, %v1239_v47  ;;  %v1505_v10 = vand.u32 2139095040, %v3074_v0 }
 0x1c0   :  { %v1364_v61 = vclz %v1892_v14  ;;  %vm3107_vm9 = vcmp.le.f32.partialorder %v1296_v5, 0.7853982  ;;  %v3111_v23 = vmul.u32.u64.low %v1241_v34, %v1240_v4  ;;  %v3112_v45 = vmul.u32.u64.high %v1241_v34, %v1240_v4, %v3111_v23 }
 0x1c1   :  { %vm1298_vm10 = vcmp.lt.s32.totalorder %v2886_v16, 0  ;;  %v1232_v12 = vsel %vm1226_vm8, %v1229_v41, %v1231_v37  ;;  %v1506_v46 = vshrl.u32 %v1505_v10, 23  ;;  %vm1079_vm11 = vweird.f32 %v2783_v63 }
 0x1c2   :  { %v1893_v20 = vadd.s32 4294967294, %v1364_v61  ;;  %vm1081_vm12 = vcmp.lt.s32.totalorder %v1080_v44, 2  ;;  %v1383_v33 = vsel %vm1298_vm10, %v1382_v8, %v1358_v1  ;;  %v1251_v5 = vadd.s32 1, %v3100_v29 }
 0x1c3   :  { %v1502_v22 = vand.u32 2147483647, %v3074_v0  ;;  %vm1082_vm13 = vcmp.eq.s32.totalorder %v1080_v44, 0  ;;  %vm1085_vm14 = vcmp.eq.s32.totalorder %v1080_v44, 2  ;;  %v1899_v42 = vadd.s32 4294967169, %v1506_v46 }
 0x1c4   :  { %vm1894_vm15 = vcmp.lt.s32.totalorder %v1893_v20, 0  ;;  %v1352_v59 = vadd.s32 %v3002_v62, %v2999_v50  ;;  %v1248_v36 = vmul.u32 %v1241_v34, %v1232_v12  ;;  %vm1250_vm0 = vc.u32 %v3112_v45, %v3099_v48 }
 0x1c5   :  { %v1367_v53 = vsel %vm1894_vm15, 0, %v1893_v20  ;;  %v1385_v1 = vsel %vm3107_vm9, 0, %v1383_v33  ;;  %v1252_v52 = vsel %vm1250_vm0, %v1251_v5, %v3100_v29  ;;  %v1509_v24 = vand.u32 8388607, %v1502_v22 }
 0x1c6   :  { %v2022_v21 = vpop.eup %2021  ;;  %v1368_v18 = vsub.s32 32, %v1367_v53  ;;  %v1372_v49 = vsub.s32 4294967266, %v1367_v53  ;;  %v1253_v25 = vadd.s32 %v1252_v52, %v1248_v36  ;;  %v1512_v50 = vadd.s32 1, %v1899_v42 }
 0x1c7   :  { %v2024_v30 = vpop.eup %2023  ;;  %v1086_v35 = vxor.u32 2147483648, %v2022_v21  ;;  %v1369_v39 = vshll.u32 %v3065_v38, %v1367_v53  ;;  %v137_v7 = vmul.f32 %v3050_v27, %v112_v32  ;;  %v1510_v6 = vor.u32 8388608, %v1509_v24 }
 0x1c8   :  { %v1083_v62 = vxor.u32 2147483648, %v2024_v30  ;;  %v1370_v56 = vshrl.u32 %v1352_v59, %v1368_v18  ;;  %v1373_v31 = vadd.s32 127, %v1372_v49  ;;  %v1254_v54 = vadd.s32 536870912, %v1253_v25 }
 0x1c9   :  { %v1087_v55 = vsel %vm1085_vm14, %v1086_v35, %v2024_v30  ;;  %vm1513_vm1 = vcmp.gt.s32.totalorder %v1512_v50, 0  ;;  %v3137_v8 = vand.u32 3, %v1385_v1  ;;  %vm1195_vm2 = vcmp.lt.s32.totalorder %v2941_v2, 0 }
 0x1ca   :  { %v1084_v57 = vsel %vm1082_vm13, %v2022_v21, %v1083_v62  ;;  %v1371_v60 = vor.u32 %v1370_v56, %v1369_v39  ;;  %v1374_v28 = vshll.u32 %v1373_v31, 23  ;;  %v1514_v40 = vsel %vm1513_vm1, %v1512_v50, 0 }
 0x1cb   :  { %v1088_v3 = vsel %vm1081_vm12, %v1084_v57, %v1087_v55  ;;  %v1255_v58 = vshrl.u32 %v1254_v54, 30  ;;  %v1516_v34 = vand.u32 31, %v1514_v40  ;;  %v1249_v61 = vadd.s32 %v3099_v48, %v3112_v45 }
 0x1cc   :  { %v1089_v38 = vsel %vm1079_vm11, nan, %v1088_v3  ;;  %v1375_v14 = vor.u32 4788187, %v1374_v28  ;;  %v1378_v29 = vcvt.s32.f32 %v1371_v60  ;;  %v3142_v44 = vadd.f32 %v3071_v11, %v137_v7 }
 0x1cd   :  { %1819 = vst [vmem:[#allocation5 + $0x40] sm:$0xff] %v1089_v38  ;;  %v1256_v41 = vshll.u32 %v1255_v58, 30  ;;  %v1517_v37 = vsub.s32 32, %v1516_v34  ;;  %v1279_v10 = vsub.s32 4, %v1255_v58  ;;  %v3147_v23 = vshll.u32 %v1510_v6, 8 }
 0x1ce   :  { %v1376_v47 = vand.u32 2147483647, %v1375_v14  ;;  %v1519_v12 = vshll.u32 %v2102_v9, %v1516_v34  ;;  %v1522_v48 = vshll.u32 %v2103_v13, %v1516_v34  ;;  %v1525_v45 = vshll.u32 %v2104_v15, %v1516_v34 }
 0x1cf   :  { %v3144_v4 = vsub.s32 %v1253_v25, %v1256_v41  ;;  %v1520_v63 = vshrl.u32 %v2103_v13, %v1517_v37  ;;  %v1523_v46 = vshrl.u32 %v2104_v15, %v1517_v37  ;;  %v1526_v33 = vshrl.u32 %v2105_v17, %v1517_v37 }
 0x1d0   :  { %v1379_v20 = vmul.f32 %v1378_v29, %v1376_v47  ;;  %v1529_v42 = vshrl.u32 %v2106_v19, %v1517_v37  ;;  %v1515_v53 = vshrl.u32 %v1514_v40, 5  ;;  %v1528_v36 = vshll.u32 %v2105_v17, %v1516_v34 }
 0x1d1   :  { %v1259_v5 = vsub.s32 0, %v3144_v4  ;;  %v1402_v21 = vand.u32 2139095040, %v3142_v44  ;;  %v1521_v49 = vor.u32 %v1520_v63, %v1519_v12  ;;  %v1524_v1 = vor.u32 %v1523_v46, %v1522_v48 }
 0x1d2   :  { %v1380_v59 = vxor.u32 2147483648, %v1379_v20  ;;  %v1527_v52 = vor.u32 %v1526_v33, %v1525_v45  ;;  %v1530_v30 = vor.u32 %v1529_v42, %v1528_v36  ;;  %v1531_v35 = vshll.u32 %v2106_v19, %v1516_v34 }
 0x1d3   :  { %v1888_v18 = vmin.u32 %v1259_v5, %v3144_v4  ;;  %v1532_v25 = vshrl.u32 %v2107_v26, %v1517_v37  ;;  %v3168_v62 = vsel %vm1195_vm2, %v1279_v10, %v1255_v58  ;;  %v1518_v39 = vshrl.u32 %v2102_v9, %v1517_v37 }
 0x1d4   :  { %v1381_v32 = vsel %vm1298_vm10, %v1380_v59, %v1379_v20  ;;  %vm1534_vm3 = vcmp.lt.s32.totalorder %v1515_v53, 1  ;;  %vm1536_vm4 = vcmp.lt.s32.totalorder %v1515_v53, 3  ;;  %vm1537_vm5 = vcmp.lt.s32.totalorder %v1515_v53, 4 }
 0x1d5   :  { %v1384_v24 = vsel %vm3107_vm9, %v2886_v16, %v1381_v32  ;;  %v1261_v50 = vclz %v1888_v18  ;;  %v1533_v56 = vor.u32 %v1532_v25, %v1531_v35  ;;  %v1542_v55 = vsel %vm1534_vm3, %v1521_v49, %v1524_v1 }
 0x1d6   :  { %2025 = vcosq.f32 %v1384_v24  ;;  %v1539_v54 = vsel %vm1537_vm5, %v1527_v52, 2102212464  ;;  %v1543_v7 = vsel %vm1537_vm5, %v1530_v30, 920167782  ;;  %v1546_v57 = vsel %vm1534_vm3, %v1524_v1, %v1527_v52 }
 0x1d7   :  { %2027 = vsinq.f32 %v1384_v24  ;;  %v1889_v31 = vadd.s32 4294967294, %v1261_v50  ;;  %v1547_v51 = vsel %vm1537_vm5, %v1533_v56, 1326507024  ;;  %vm1535_vm7 = vcmp.lt.s32.totalorder %v1515_v53, 2 }
 0x1d8   :  { %v1544_v60 = vsel %vm1536_vm4, %v1527_v52, %v1543_v7  ;;  %v1548_v28 = vsel %vm1536_vm4, %v1530_v30, %v1547_v51  ;;  %v1538_v3 = vsel %vm1534_vm3, %v1518_v39, %v1521_v49  ;;  %v1540_v14 = vsel %vm1536_vm4, %v1524_v1, %v1539_v54  ;;  %v118_v30 = vpop.xlane.xlu1 %117 }
 0x1d9   :  { %vm1890_vm6 = vcmp.lt.s32.totalorder %v1889_v31, 0  ;;  %v1545_v58 = vsel %vm1535_vm7, %v1542_v55, %v1544_v60  ;;  %v1549_v6 = vsel %vm1535_vm7, %v1546_v57, %v1548_v28  ;;  %v1403_v41 = vshrl.u32 %v1402_v21, 23 }
 0x1da   :  { %v1264_v40 = vsel %vm1890_vm6, 0, %v1889_v31  ;;  %v3177_v37 = vmul.u32.u64.low %v3147_v23, %v1549_v6  ;;  %v3178_v47 = vmul.u32.u64.high %v3147_v23, %v1549_v6, %v3177_v37  ;;  %vm3188_vm8 = vcmp.le.f32.partialorder %v1193_v43, 0.7853982 }
 0x1db   :  { %v1265_v34 = vsub.s32 32, %v1264_v40  ;;  %v1269_v38 = vsub.s32 4294967266, %v1264_v40  ;;  %v3181_v29 = vmul.u32.u64.low %v3147_v23, %v1545_v58  ;;  %v3182_v10 = vmul.u32.u64.high %v3147_v23, %v1545_v58, %v3181_v29 }
 0x1dc   :  { %v1266_v63 = vshll.u32 %v3144_v4, %v1264_v40  ;;  %v1895_v46 = vadd.s32 4294967169, %v1403_v41  ;;  %v1541_v5 = vsel %vm1535_vm7, %v1538_v3, %v1540_v14  ;;  %v1399_v48 = vand.u32 2147483647, %v3142_v44 }
 0x1dd   :  { %v1267_v20 = vshrl.u32 %v1249_v61, %v1265_v34  ;;  %v1270_v12 = vadd.s32 127, %v1269_v38  ;;  %vm1391_vm9 = vcmp.eq.s32.totalorder %v3137_v8, 0  ;;  %vm1394_vm10 = vcmp.eq.s32.totalorder %v3137_v8, 2 }
 0x1de   :  { %v1409_v59 = vadd.s32 1, %v1895_v46  ;;  %v1282_v61 = vsel %vm3188_vm8, 0, %v3168_v62  ;;  %vm1559_vm11 = vc.u32 %v3178_v47, %v3181_v29  ;;  %v1560_v43 = vadd.s32 1, %v3182_v10  ;;  %v116_v62 = vpop.xlane.xlu0 %115 }
 0x1df   :  { %v1268_v45 = vor.u32 %v1267_v20, %v1266_v63  ;;  %v1271_v42 = vshll.u32 %v1270_v12, 23  ;;  %v1557_v18 = vmul.u32 %v3147_v23, %v1541_v5  ;;  %v1406_v52 = vand.u32 8388607, %v1399_v48 }
 0x1e0   :  { %v2026_v36 = vpop.eup %2025  ;;  %vm1410_vm12 = vcmp.gt.s32.totalorder %v1409_v59, 0  ;;  %v1561_v1 = vsel %vm1559_vm11, %v1560_v43, %v3182_v10  ;;  %vm1388_vm13 = vweird.f32 %v2886_v16  ;;  %vm1390_vm14 = vcmp.lt.s32.totalorder %v3137_v8, 2 }
 0x1e1   :  { %v2028_v4 = vpop.eup %2027  ;;  %v1395_v53 = vxor.u32 2147483648, %v2026_v36  ;;  %v1272_v21 = vor.u32 4788187, %v1271_v42  ;;  %v1411_v32 = vsel %vm1410_vm12, %v1409_v59, 0  ;;  %v1275_v24 = vcvt.s32.f32 %v1268_v45 }
 0x1e2   :  { %v1392_v49 = vxor.u32 2147483648, %v2028_v4  ;;  %v1562_v50 = vadd.s32 %v1561_v1, %v1557_v18  ;;  %v1413_v39 = vand.u32 31, %v1411_v32  ;;  %v140_v54 = vmul.f32 %v3050_v27, %v118_v30 }
 0x1e3   :  { %v1396_v35 = vsel %vm1394_vm10, %v1395_v53, %v2028_v4  ;;  %v1273_v25 = vand.u32 2147483647, %v1272_v21  ;;  %v3211_v57 = vand.u32 3, %v1282_v61  ;;  %v3214_v60 = vmul.f32 %v3050_v27, %v116_v62 }
 0x1e4   :  { %v1393_v23 = vsel %vm1391_vm9, %v2026_v36, %v1392_v49  ;;  %v1563_v55 = vadd.s32 536870912, %v1562_v50  ;;  %v1414_v51 = vsub.s32 32, %v1413_v39  ;;  %v1407_v40 = vor.u32 8388608, %v1406_v52 }
 0x1e5   :  { %v1397_v56 = vsel %vm1390_vm14, %v1393_v23, %v1396_v35  ;;  %v1276_v31 = vmul.f32 %v1275_v24, %v1273_v25  ;;  %v1416_v8 = vshll.u32 %v2102_v9, %v1413_v39  ;;  %v1419_v58 = vshll.u32 %v2103_v13, %v1413_v39 }
 0x1e6   :  { %v1398_v7 = vsel %vm1388_vm13, nan, %v1397_v56  ;;  %v3216_v28 = vshrl.u32 %v1563_v55, 30  ;;  %v1417_v3 = vshrl.u32 %v2103_v13, %v1414_v51  ;;  %v1420_v6 = vshrl.u32 %v2104_v15, %v1414_v51 }
 0x1e7   :  { %1822 = vst [vmem:[#allocation5 + $0x58] sm:$0xff] %v1398_v7  ;;  %v1277_v16 = vxor.u32 2147483648, %v1276_v31  ;;  %v1423_v34 = vshrl.u32 %v2105_v17, %v1414_v51  ;;  %v1422_v14 = vshll.u32 %v2104_v15, %v1413_v39  ;;  %v1426_v41 = vshrl.u32 %v2106_v19, %v1414_v51 }
 0x1e8   :  { %v1565_v27 = vshll.u32 %v3216_v28, 30  ;;  %v1412_v10 = vshrl.u32 %v1411_v32, 5  ;;  %v1418_v63 = vor.u32 %v1417_v3, %v1416_v8  ;;  %v1425_v20 = vshll.u32 %v2105_v17, %v1413_v39 }
 0x1e9   :  { %v1278_v38 = vsel %vm1195_vm2, %v1277_v16, %v1276_v31  ;;  %v1421_v46 = vor.u32 %v1420_v6, %v1419_v58  ;;  %v1424_v5 = vor.u32 %v1423_v34, %v1422_v14  ;;  %v1428_v42 = vshll.u32 %v2106_v19, %v1413_v39 }
 0x1ea   :  { %v1281_v37 = vsel %vm3188_vm8, %v2941_v2, %v1278_v38  ;;  %v3232_v12 = vsub.s32 %v1562_v50, %v1565_v27  ;;  %v1427_v45 = vor.u32 %v1426_v41, %v1425_v20  ;;  %v1429_v59 = vshrl.u32 %v2107_v26, %v1414_v51 }
 0x1eb   :  { %2029 = vcosq.f32 %v1281_v37  ;;  %v1415_v33 = vshrl.u32 %v2102_v9, %v1414_v51  ;;  %v1447_v61 = vshll.u32 %v1407_v40, 8  ;;  %v3239_v43 = vadd.f32 %v3071_v11, %v140_v54 }
 0x1ec   :  { %2031 = vsinq.f32 %v1281_v37  ;;  %v1568_v36 = vsub.s32 0, %v3232_v12  ;;  %v1430_v4 = vor.u32 %v1429_v59, %v1428_v42  ;;  %vm1431_vm15 = vcmp.lt.s32.totalorder %v1412_v10, 1 }
 0x1ed   :  { %vm1432_vm0 = vcmp.lt.s32.totalorder %v1412_v10, 2  ;;  %vm1433_vm1 = vcmp.lt.s32.totalorder %v1412_v10, 3  ;;  %vm1434_vm2 = vcmp.lt.s32.totalorder %v1412_v10, 4  ;;  %v1435_v21 = vsel %vm1431_vm15, %v1415_v33, %v1418_v63 }
 0x1ee   :  { %v1900_v53 = vmin.u32 %v1568_v36, %v3232_v12  ;;  %v1439_v18 = vsel %vm1431_vm15, %v1418_v63, %v1421_v46  ;;  %v1436_v49 = vsel %vm1434_vm2, %v1424_v5, 2102212464  ;;  %v1440_v1 = vsel %vm1434_vm2, %v1427_v45, 920167782 }
 0x1ef   :  { %v1443_v52 = vsel %vm1431_vm15, %v1421_v46, %v1424_v5  ;;  %v1444_v32 = vsel %vm1434_vm2, %v1430_v4, 1326507024  ;;  %v1437_v35 = vsel %vm1433_vm1, %v1421_v46, %v1436_v49  ;;  %v1441_v25 = vsel %vm1433_vm1, %v1424_v5, %v1440_v1 }
 0x1f0   :  { %v1570_v30 = vclz %v1900_v53  ;;  %v1445_v24 = vsel %vm1433_vm1, %v1427_v45, %v1444_v32  ;;  %vm1287_vm3 = vcmp.lt.s32.totalorder %v3211_v57, 2  ;;  %v1442_v50 = vsel %vm1432_vm0, %v1439_v18, %v1441_v25 }
 0x1f1   :  { %v1446_v62 = vsel %vm1432_vm0, %v1443_v52, %v1445_v24  ;;  %v1711_v23 = vand.u32 2139095040, %v3239_v43  ;;  %vm1288_vm4 = vcmp.eq.s32.totalorder %v3211_v57, 0  ;;  %v1438_v55 = vsel %vm1432_vm0, %v1435_v21, %v1437_v35 }
 0x1f2   :  { %v1901_v39 = vadd.s32 4294967294, %v1570_v30  ;;  %v3247_v56 = vmul.u32.u64.low %v1447_v61, %v1446_v62  ;;  %v3248_v31 = vmul.u32.u64.high %v1447_v61, %v1446_v62, %v3247_v56  ;;  %vm1291_vm5 = vcmp.eq.s32.totalorder %v3211_v57, 2 }
 0x1f3   :  { %v3251_v54 = vmul.u32.u64.low %v1447_v61, %v1442_v50  ;;  %v3252_v7 = vmul.u32.u64.high %v1447_v61, %v1442_v50, %v3251_v54  ;;  %v1712_v51 = vshrl.u32 %v1711_v23, 23  ;;  %v1558_v40 = vadd.s32 %v3181_v29, %v3178_v47 }
 0x1f4   :  { %vm1902_vm6 = vcmp.lt.s32.totalorder %v1901_v39, 0  ;;  %v1708_v8 = vand.u32 2147483647, %v3239_v43  ;;  %v1588_v34 = vsub.s32 4, %v3216_v28  ;;  %v1454_v37 = vmul.u32 %v1447_v61, %v1438_v55 }
 0x1f5   :  { %v2030_v16 = vpop.eup %2029  ;;  %v1573_v6 = vsel %vm1902_vm6, 0, %v1901_v39  ;;  %v1907_v38 = vadd.s32 4294967169, %v1712_v51  ;;  %vm1456_vm7 = vc.u32 %v3248_v31, %v3251_v54  ;;  %v1457_v47 = vadd.s32 1, %v3252_v7 }
 0x1f6   :  { %v2032_v3 = vpop.eup %2031  ;;  %v1292_v58 = vxor.u32 2147483648, %v2030_v16  ;;  %v1574_v14 = vsub.s32 32, %v1573_v6  ;;  %v1578_v41 = vsub.s32 4294967266, %v1573_v6  ;;  %v1575_v63 = vshll.u32 %v3232_v12, %v1573_v6 }
 0x1f7   :  { %v1289_v27 = vxor.u32 2147483648, %v2032_v3  ;;  %v1718_v5 = vadd.s32 1, %v1907_v38  ;;  %vm1285_vm8 = vweird.f32 %v2941_v2  ;;  %v1458_v42 = vsel %vm1456_vm7, %v1457_v47, %v3252_v7 }
 0x1f8   :  { %v1293_v10 = vsel %vm1291_vm5, %v1292_v58, %v2032_v3  ;;  %v1576_v20 = vshrl.u32 %v1558_v40, %v1574_v14  ;;  %v1579_v46 = vadd.s32 127, %v1578_v41  ;;  %v1459_v33 = vadd.s32 %v1458_v42, %v1454_v37 }
 0x1f9   :  { %v1290_v29 = vsel %vm1288_vm4, %v2030_v16, %v1289_v27  ;;  %vm1504_vm9 = vcmp.lt.s32.totalorder %v3074_v0, 0  ;;  %v1715_v61 = vand.u32 8388607, %v1708_v8  ;;  %vm1719_vm10 = vcmp.gt.s32.totalorder %v1718_v5, 0 }
 0x1fa   :  { %v1294_v45 = vsel %vm1287_vm3, %v1290_v29, %v1293_v10  ;;  %v1577_v12 = vor.u32 %v1576_v20, %v1575_v63  ;;  %v1580_v36 = vshll.u32 %v1579_v46, 23  ;;  %v3275_v4 = vadd.f32 %v3071_v11, %v3214_v60 }
 0x1fb   :  { %v1295_v59 = vsel %vm1285_vm8, nan, %v1294_v45  ;;  %v1589_v57 = vsel %vm1504_vm9, %v1588_v34, %v3216_v28  ;;  %v1460_v53 = vadd.s32 536870912, %v1459_v33  ;;  %v1720_v21 = vsel %vm1719_vm10, %v1718_v5, 0 }
 0x1fc   :  { %1821 = vst [vmem:[#allocation5 + $0x50] sm:$0xff] %v1295_v59  ;;  %v1581_v2 = vor.u32 4788187, %v1580_v36  ;;  %v1722_v18 = vand.u32 31, %v1720_v21  ;;  %vm3282_vm11 = vcmp.le.f32.partialorder %v1502_v22, 0.7853982  ;;  %v1584_v52 = vcvt.s32.f32 %v1577_v12 }
 0x1fd   :  { %v3286_v32 = vshrl.u32 %v1460_v53, 30  ;;  %v1591_v11 = vsel %vm3282_vm11, 0, %v1589_v57  ;;  %v1716_v60 = vor.u32 8388608, %v1715_v61  ;;  %v1608_v24 = vand.u32 2139095040, %v3275_v4 }
 0x1fe   :  { %v1582_v1 = vand.u32 2147483647, %v1581_v2  ;;  %v1723_v30 = vsub.s32 32, %v1722_v18  ;;  %v1725_v25 = vshll.u32 %v2102_v9, %v1722_v18  ;;  %v1728_v50 = vshll.u32 %v2103_v13, %v1722_v18 }
 0x1ff   :  { %v1462_v28 = vshll.u32 %v3286_v32, 30  ;;  %v1731_v55 = vshll.u32 %v2104_v15, %v1722_v18  ;;  %v3301_v51 = vand.u32 3, %v1591_v11  ;;  %v1721_v16 = vshrl.u32 %v1720_v21, 5 }
 0x200   :  { %v1585_v35 = vmul.f32 %v1584_v52, %v1582_v1  ;;  %v1726_v22 = vshrl.u32 %v2103_v13, %v1723_v30  ;;  %v1729_v62 = vshrl.u32 %v2104_v15, %v1723_v30  ;;  %v1732_v23 = vshrl.u32 %v2105_v17, %v1723_v30 }
 0x201   :  { %v3297_v56 = vsub.s32 %v1459_v33, %v1462_v28  ;;  %v1735_v7 = vshrl.u32 %v2106_v19, %v1723_v30  ;;  %v1734_v3 = vshll.u32 %v2105_v17, %v1722_v18  ;;  %v1737_v41 = vshll.u32 %v2106_v19, %v1722_v18 }
 0x202   :  { %v1586_v39 = vxor.u32 2147483648, %v1585_v35  ;;  %v1727_v40 = vor.u32 %v1726_v22, %v1725_v25  ;;  %v1730_v34 = vor.u32 %v1729_v62, %v1728_v50  ;;  %v1733_v38 = vor.u32 %v1732_v23, %v1731_v55 }
 0x203   :  { %v1465_v6 = vsub.s32 0, %v3297_v56  ;;  %v1736_v14 = vor.u32 %v1735_v7, %v1734_v3  ;;  %v1738_v37 = vshrl.u32 %v2107_v26, %v1723_v30  ;;  %v1756_v63 = vshll.u32 %v1716_v60, 8 }
 0x204   :  { %v1587_v58 = vsel %vm1504_vm9, %v1586_v39, %v1585_v35  ;;  %v1609_v47 = vshrl.u32 %v1608_v24, 23  ;;  %v1724_v29 = vshrl.u32 %v2102_v9, %v1723_v30  ;;  %vm1740_vm12 = vcmp.lt.s32.totalorder %v1721_v16, 1 }
 0x205   :  { %v1590_v27 = vsel %vm3282_vm11, %v3074_v0, %v1587_v58  ;;  %v1896_v10 = vmin.u32 %v1465_v6, %v3297_v56  ;;  %v1739_v20 = vor.u32 %v1738_v37, %v1737_v41  ;;  %vm1741_vm13 = vcmp.lt.s32.totalorder %v1721_v16, 2 }
 0x206   :  { %2033 = vcosq.f32 %v1590_v27  ;;  %vm1742_vm14 = vcmp.lt.s32.totalorder %v1721_v16, 3  ;;  %vm1743_vm15 = vcmp.lt.s32.totalorder %v1721_v16, 4  ;;  %v1748_v45 = vsel %vm1740_vm12, %v1727_v40, %v1730_v34 }
 0x207   :  { %2035 = vsinq.f32 %v1590_v27  ;;  %v1467_v46 = vclz %v1896_v10  ;;  %v1745_v5 = vsel %vm1743_vm15, %v1733_v38, 2102212464  ;;  %v1749_v42 = vsel %vm1743_vm15, %v1736_v14, 920167782 }
 0x208   :  { %v1752_v59 = vsel %vm1740_vm12, %v1730_v34, %v1733_v38  ;;  %v1744_v36 = vsel %vm1740_vm12, %v1724_v29, %v1727_v40  ;;  %v1750_v33 = vsel %vm1742_vm14, %v1733_v38, %v1749_v42  ;;  %v1753_v61 = vsel %vm1743_vm15, %v1739_v20, 1326507024 }
 0x209   :  { %v1897_v12 = vadd.s32 4294967294, %v1467_v46  ;;  %v1746_v2 = vsel %vm1742_vm14, %v1730_v34, %v1745_v5  ;;  %v1751_v57 = vsel %vm1741_vm13, %v1748_v45, %v1750_v33  ;;  %v1754_v53 = vsel %vm1742_vm14, %v1736_v14, %v1753_v61 }
 0x20a   :  { %v1903_v21 = vadd.s32 4294967169, %v1609_v47  ;;  %v1755_v18 = vsel %vm1741_vm13, %v1752_v59, %v1754_v53  ;;  %v3316_v49 = vmul.u32.u64.low %v1756_v63, %v1751_v57  ;;  %v3317_v1 = vmul.u32.u64.high %v1756_v63, %v1751_v57, %v3316_v49 }
 0x20b   :  { %vm1898_vm0 = vcmp.lt.s32.totalorder %v1897_v12, 0  ;;  %v1455_v52 = vadd.s32 %v3251_v54, %v3248_v31  ;;  %v3322_v60 = vmul.u32.u64.low %v1756_v63, %v1755_v18  ;;  %v3323_v30 = vmul.u32.u64.high %v1756_v63, %v1755_v18, %v3322_v60 }
 0x20c   :  { %v1470_v11 = vsel %vm1898_vm0, 0, %v1897_v12  ;;  %v1747_v25 = vsel %vm1741_vm13, %v1744_v36, %v1746_v2  ;;  %v1615_v24 = vadd.s32 1, %v1903_v21  ;;  %vm1597_vm1 = vcmp.eq.s32.totalorder %v3301_v51, 0 }
 0x20d   :  { %v1471_v35 = vsub.s32 32, %v1470_v11  ;;  %v1475_v28 = vsub.s32 4294967266, %v1470_v11  ;;  %vm1600_vm2 = vcmp.eq.s32.totalorder %v3301_v51, 2  ;;  %v1472_v22 = vshll.u32 %v3297_v56, %v1470_v11 }
 0x20e   :  { %v1605_v50 = vand.u32 2147483647, %v3275_v4  ;;  %v1766_v54 = vadd.s32 1, %v3317_v1  ;;  %vm1616_vm3 = vcmp.gt.s32.totalorder %v1615_v24, 0  ;;  %v1763_v7 = vmul.u32 %v1756_v63, %v1747_v25 }
 0x20f   :  { %v1473_v23 = vshrl.u32 %v1455_v52, %v1471_v35  ;;  %v1476_v31 = vadd.s32 127, %v1475_v28  ;;  %vm1765_vm4 = vc.u32 %v3323_v30, %v3316_v49  ;;  %v1617_v16 = vsel %vm1616_vm3, %v1615_v24, 0 }
 0x210   :  { %v2034_v62 = vpop.eup %2033  ;;  %v1767_v56 = vsel %vm1765_vm4, %v1766_v54, %v3317_v1  ;;  %v1612_v38 = vand.u32 8388607, %v1605_v50  ;;  %v1619_v27 = vand.u32 31, %v1617_v16  ;;  %vm1594_vm5 = vweird.f32 %v3074_v0 }
 0x211   :  { %v2036_v39 = vpop.eup %2035  ;;  %v1601_v55 = vxor.u32 2147483648, %v2034_v62  ;;  %v1474_v3 = vor.u32 %v1473_v23, %v1472_v22  ;;  %v1477_v58 = vshll.u32 %v1476_v31, 23  ;;  %v1768_v34 = vadd.s32 %v1767_v56, %v1763_v7 }
 0x212   :  { %v1598_v40 = vxor.u32 2147483648, %v2036_v39  ;;  %vm1596_vm6 = vcmp.lt.s32.totalorder %v3301_v51, 2  ;;  %v1485_v10 = vsub.s32 4, %v3286_v32  ;;  %v1620_v47 = vsub.s32 32, %v1619_v27 }
 0x213   :  { %v1602_v6 = vsel %vm1600_vm2, %v1601_v55, %v2036_v39  ;;  %v1478_v41 = vor.u32 4788187, %v1477_v58  ;;  %v1769_v63 = vadd.s32 536870912, %v1768_v34  ;;  %vm1401_vm7 = vcmp.lt.s32.totalorder %v3142_v44, 0 }
 0x214   :  { %v1599_v14 = vsel %vm1597_vm1, %v2034_v62, %v1598_v40  ;;  %v1481_v46 = vcvt.s32.f32 %v1474_v3  ;;  %v1613_v0 = vor.u32 8388608, %v1612_v38  ;;  %v1623_v45 = vshrl.u32 %v2103_v13, %v1620_v47 }
 0x215   :  { %v1603_v37 = vsel %vm1596_vm6, %v1599_v14, %v1602_v6  ;;  %v1479_v20 = vand.u32 2147483647, %v1478_v41  ;;  %v3344_v5 = vshrl.u32 %v1769_v63, 30  ;;  %v1626_v51 = vshrl.u32 %v2104_v15, %v1620_v47 }
 0x216   :  { %v1604_v29 = vsel %vm1594_vm5, nan, %v1603_v37  ;;  %v1622_v59 = vshll.u32 %v2102_v9, %v1619_v27  ;;  %v1629_v12 = vshrl.u32 %v2105_v17, %v1620_v47  ;;  %v1632_v36 = vshrl.u32 %v2106_v19, %v1620_v47 }
 0x217   :  { %1824 = vst [vmem:[#allocation5 + $0x68] sm:$0xff] %v1604_v29  ;;  %v1482_v42 = vmul.f32 %v1481_v46, %v1479_v20  ;;  %v1486_v33 = vsel %vm1401_vm7, %v1485_v10, %v3286_v32  ;;  %v1771_v61 = vshll.u32 %v3344_v5, 30  ;;  %v1618_v2 = vshrl.u32 %v1617_v16, 5 }
 0x218   :  { %v1625_v57 = vshll.u32 %v2103_v13, %v1619_v27  ;;  %v1624_v21 = vor.u32 %v1623_v45, %v1622_v59  ;;  %v1628_v18 = vshll.u32 %v2104_v15, %v1619_v27  ;;  %v1631_v1 = vshll.u32 %v2105_v17, %v1619_v27 }
 0x219   :  { %v1483_v53 = vxor.u32 2147483648, %v1482_v42  ;;  %v1772_v52 = vsub.s32 %v1768_v34, %v1771_v61  ;;  %v1634_v60 = vshll.u32 %v2106_v19, %v1619_v27  ;;  %v1635_v35 = vshrl.u32 %v2107_v26, %v1620_v47 }
 0x21a   :  { %v1627_v11 = vor.u32 %v1626_v51, %v1625_v57  ;;  %vm3362_vm8 = vcmp.le.f32.partialorder %v1399_v48, 0.7853982  ;;  %v1630_v28 = vor.u32 %v1629_v12, %v1628_v18  ;;  %v1633_v25 = vor.u32 %v1632_v36, %v1631_v1 }
 0x21b   :  { %v1484_v13 = vsel %vm1401_vm7, %v1483_v53, %v1482_v42  ;;  %v1488_v17 = vsel %vm3362_vm8, 0, %v1486_v33  ;;  %v1774_v19 = vsub.s32 0, %v1772_v52  ;;  %v1636_v26 = vor.u32 %v1635_v35, %v1634_v60 }
 0x21c   :  { %v1487_v15 = vsel %vm3362_vm8, %v3142_v44, %v1484_v13  ;;  %v1621_v48 = vshrl.u32 %v2102_v9, %v1620_v47  ;;  %vm1637_vm9 = vcmp.lt.s32.totalorder %v1618_v2, 1  ;;  %v1653_v24 = vshll.u32 %v1613_v0, 8 }
 0x21d   :  { %2037 = vcosq.f32 %v1487_v15  ;;  %v1908_v22 = vmin.u32 %v1774_v19, %v1772_v52  ;;  %vm1640_vm10 = vcmp.lt.s32.totalorder %v1618_v2, 4  ;;  %v1645_v62 = vsel %vm1637_vm9, %v1624_v21, %v1627_v11 }
 0x21e   :  { %2039 = vsinq.f32 %v1487_v15  ;;  %vm1639_vm11 = vcmp.lt.s32.totalorder %v1618_v2, 3  ;;  %v1642_v23 = vsel %vm1640_vm10, %v1630_v28, 2102212464  ;;  %v1646_v31 = vsel %vm1640_vm10, %v1633_v25, 920167782 }
 0x21f   :  { %v1649_v54 = vsel %vm1637_vm9, %v1627_v11, %v1630_v28  ;;  %v1776_v39 = vclz %v1908_v22  ;;  %vm1638_vm12 = vcmp.lt.s32.totalorder %v1618_v2, 2  ;;  %v1647_v55 = vsel %vm1639_vm11, %v1630_v28, %v1646_v31 }
 0x220   :  { %v1650_v7 = vsel %vm1640_vm10, %v1636_v26, 1326507024  ;;  %v1641_v16 = vsel %vm1637_vm9, %v1621_v48, %v1624_v21  ;;  %v1643_v40 = vsel %vm1639_vm11, %v1627_v11, %v1642_v23  ;;  %v1648_v3 = vsel %vm1638_vm12, %v1645_v62, %v1647_v55 }
 0x221   :  { %v1651_v58 = vsel %vm1639_vm11, %v1633_v25, %v1650_v7  ;;  %v1909_v56 = vadd.s32 4294967294, %v1776_v39  ;;  %v3374_v6 = vmul.u32.u64.low %v1653_v24, %v1648_v3  ;;  %v3375_v34 = vmul.u32.u64.high %v1653_v24, %v1648_v3, %v3374_v6 }
 0x222   :  { %v1652_v9 = vsel %vm1638_vm12, %v1649_v54, %v1651_v58  ;;  %v1644_v14 = vsel %vm1638_vm12, %v1641_v16, %v1643_v40  ;;  %v1492_v41 = vand.u32 3, %v1488_v17  ;;  %v1764_v10 = vadd.s32 %v3316_v49, %v3323_v30 }
 0x223   :  { %v3377_v38 = vmul.u32.u64.low %v1653_v24, %v1652_v9  ;;  %v3378_v27 = vmul.u32.u64.high %v1653_v24, %v1652_v9, %v3377_v38  ;;  %vm1910_vm13 = vcmp.lt.s32.totalorder %v1909_v56, 0  ;;  %v1663_v29 = vadd.s32 1, %v3375_v34 }
 0x224   :  { %v1779_v37 = vsel %vm1910_vm13, 0, %v1909_v56  ;;  %v1660_v0 = vmul.u32 %v1653_v24, %v1644_v14  ;;  %vm1497_vm15 = vcmp.eq.s32.totalorder %v1492_v41, 2  ;;  %vm1494_vm0 = vcmp.eq.s32.totalorder %v1492_v41, 0 }
 0x225   :  { %v1780_v63 = vsub.s32 32, %v1779_v37  ;;  %v1784_v47 = vsub.s32 4294967266, %v1779_v37  ;;  %v1781_v46 = vshll.u32 %v1772_v52, %v1779_v37  ;;  %vm1662_vm14 = vc.u32 %v3378_v27, %v3374_v6 }
 0x226   :  { %v1664_v12 = vsel %vm1662_vm14, %v1663_v29, %v3375_v34  ;;  %vm1493_vm1 = vcmp.lt.s32.totalorder %v1492_v41, 2  ;;  %vm1491_vm2 = vweird.f32 %v3142_v44  ;;  %vm1710_vm3 = vcmp.lt.s32.totalorder %v3239_v43, 0 }
 0x227   :  { %v2038_v20 = vpop.eup %2037  ;;  %v1782_v42 = vshrl.u32 %v1764_v10, %v1780_v63  ;;  %v1785_v59 = vadd.s32 127, %v1784_v47  ;;  %v1665_v33 = vadd.s32 %v1664_v12, %v1660_v0  ;;  %vm3389_vm4 = vcmp.le.f32.partialorder %v1708_v8, 0.7853982 }
 0x228   :  { %v2040_v45 = vpop.eup %2039  ;;  %v1498_v51 = vxor.u32 2147483648, %v2038_v20  ;;  %v1794_v15 = vsub.s32 4, %v3344_v5  ;;  %v1661_v62 = vadd.s32 %v3374_v6, %v3378_v27  ;;  %vm1800_vm9 = vweird.f32 %v3239_v43 }
 0x229   :  { %v1495_v36 = vxor.u32 2147483648, %v2040_v45  ;;  %v1783_v30 = vor.u32 %v1782_v42, %v1781_v46  ;;  %v1786_v61 = vshll.u32 %v1785_v59, 23  ;;  %v1666_v57 = vadd.s32 536870912, %v1665_v33 }
 0x22a   :  { %v1499_v49 = vsel %vm1497_vm15, %v1498_v51, %v2040_v45  ;;  %v1795_v48 = vsel %vm1710_vm3, %v1794_v15, %v3344_v5  ;;  %vm1607_vm10 = vcmp.lt.s32.totalorder %v3275_v4, 0  ;;  %vm1606_vm11 = vcmp.le.f32.partialorder %v1605_v50, 0.7853982 }
 0x22b   :  { %v1496_v2 = vsel %vm1494_vm0, %v2038_v20, %v1495_v36  ;;  %v1787_v21 = vor.u32 4788187, %v1786_v61  ;;  %v1667_v1 = vshrl.u32 %v1666_v57, 30  ;;  %v1790_v11 = vcvt.s32.f32 %v1783_v30 }
 0x22c   :  { %v1500_v53 = vsel %vm1493_vm1, %v1496_v2, %v1499_v49  ;;  %v1797_v8 = vsel %vm3389_vm4, 0, %v1795_v48  ;;  %vm1697_vm15 = vweird.f32 %v3275_v4 }
 0x22d   :  { %v1501_v18 = vsel %vm1491_vm2, nan, %v1500_v53  ;;  %v1788_v52 = vand.u32 2147483647, %v1787_v21  ;;  %v1668_v60 = vshll.u32 %v1667_v1, 30  ;;  %v1801_v54 = vand.u32 3, %v1797_v8 }
 0x22e   :  { %1823 = vst [vmem:[#allocation5 + $0x60] sm:$0xff] %v1501_v18  ;;  %v1691_v47 = vsub.s32 4, %v1667_v1 }
 0x22f   :  { %v1791_v35 = vmul.f32 %v1790_v11, %v1788_v52  ;;  %v1669_v32 = vsub.s32 %v1665_v33, %v1668_v60  ;;  %vm1806_vm6 = vcmp.eq.s32.totalorder %v1801_v54, 2  ;;  %vm1803_vm7 = vcmp.eq.s32.totalorder %v1801_v54, 0 }
 0x230   :  { %vm1802_vm8 = vcmp.lt.s32.totalorder %v1801_v54, 2  ;;  %v1692_v20 = vsel %vm1607_vm10, %v1691_v47, %v1667_v1 }
 0x231   :  { %v1792_v13 = vxor.u32 2147483648, %v1791_v35  ;;  %v1671_v28 = vsub.s32 0, %v1669_v32 }
 0x233   :  { %v1793_v44 = vsel %vm1710_vm3, %v1792_v13, %v1791_v35  ;;  %v1904_v19 = vmin.u32 %v1671_v28, %v1669_v32 }
 0x234   :  { %v1796_v17 = vsel %vm3389_vm4, %v3239_v43, %v1793_v44  ;;  %v1694_v43 = vsel %vm1606_vm11, 0, %v1692_v20 }
 0x235   :  { %2041 = vcosq.f32 %v1796_v17  ;;  %v1673_v26 = vclz %v1904_v19  ;;  %v1698_v46 = vand.u32 3, %v1694_v43 }
 0x236   :  { %2043 = vsinq.f32 %v1796_v17 }
 0x237   :  { %v1905_v24 = vadd.s32 4294967294, %v1673_v26  ;;  %vm1703_vm12 = vcmp.eq.s32.totalorder %v1698_v46, 2  ;;  %vm1700_vm13 = vcmp.eq.s32.totalorder %v1698_v46, 0  ;;  %vm1699_vm14 = vcmp.lt.s32.totalorder %v1698_v46, 2 }
 0x239   :  { %vm1906_vm5 = vcmp.lt.s32.totalorder %v1905_v24, 0 }
 0x23a   :  { %v1676_v22 = vsel %vm1906_vm5, 0, %v1905_v24 }
 0x23b   :  { %v1677_v23 = vsub.s32 32, %v1676_v22  ;;  %v1681_v31 = vsub.s32 4294967266, %v1676_v22  ;;  %v1678_v39 = vshll.u32 %v1669_v32, %v1676_v22 }
 0x23d   :  { %v1679_v55 = vshrl.u32 %v1661_v62, %v1677_v23  ;;  %v1682_v7 = vadd.s32 127, %v1681_v31 }
 0x23f   :  { %v2042_v16 = vpop.eup %2041  ;;  %v1680_v58 = vor.u32 %v1679_v55, %v1678_v39  ;;  %v1683_v56 = vshll.u32 %v1682_v7, 23 }
 0x240   :  { %v2044_v40 = vpop.eup %2043  ;;  %v1807_v3 = vxor.u32 2147483648, %v2042_v16 }
 0x241   :  { %v1804_v5 = vxor.u32 2147483648, %v2044_v40  ;;  %v1684_v34 = vor.u32 4788187, %v1683_v56  ;;  %v1687_v14 = vcvt.s32.f32 %v1680_v58 }
 0x242   :  { %v1808_v9 = vsel %vm1806_vm6, %v1807_v3, %v2044_v40 }
 0x243   :  { %v1805_v38 = vsel %vm1803_vm7, %v2042_v16, %v1804_v5  ;;  %v1685_v27 = vand.u32 2147483647, %v1684_v34 }
 0x244   :  { %v1809_v6 = vsel %vm1802_vm8, %v1805_v38, %v1808_v9 }
 0x245   :  { %v1810_v41 = vsel %vm1800_vm9, nan, %v1809_v6  ;;  %v1688_v37 = vmul.f32 %v1687_v14, %v1685_v27 }
 0x246   :  { %1826 = vst [vmem:[#allocation5 + $0x78] sm:$0xff] %v1810_v41 }
 0x247   :  { %v1689_v10 = vxor.u32 2147483648, %v1688_v37 }
 0x249   :  { %v1690_v63 = vsel %vm1607_vm10, %v1689_v10, %v1688_v37 }
 0x24a   :  { %v1693_v29 = vsel %vm1606_vm11, %v3275_v4, %v1690_v63 }
 0x24b   :  { %2045 = vcosq.f32 %v1693_v29 }
 0x24c   :  { %2047 = vsinq.f32 %v1693_v29 }
 0x255   :  { %v2046_v0 = vpop.eup %2045 }
 0x256   :  { %v2048_v45 = vpop.eup %2047  ;;  %v1704_v51 = vxor.u32 2147483648, %v2046_v0 }
 0x257   :  { %v1701_v42 = vxor.u32 2147483648, %v2048_v45 }
 0x258   :  { %v1705_v59 = vsel %vm1703_vm12, %v1704_v51, %v2048_v45 }
 0x259   :  { %v1702_v50 = vsel %vm1700_vm13, %v2046_v0, %v1701_v42 }
 0x25a   :  { %v1706_v12 = vsel %vm1699_vm14, %v1702_v50, %v1705_v59 }
 0x25b   :  { %v1707_v36 = vsel %vm1697_vm15, nan, %v1706_v12 }
 0x25c   :  { %1825 = vst [vmem:[#allocation5 + $0x70] sm:$0xff] %v1707_v36 }
 0x25d   :  { %2086 = shalt.err (!%p2083_p12)
}
 0x25e   :  { %s2087_s12 = scalar_lea.hbm %s3422_s3, 2048 }
 0x25f   :  { %p2088_p13 = scmp.ne.s32.totalorder %s3422_s3, %s2087_s12  ;;  %p2091_p0 = scmp.lt.u32.totalorder %s2087_s12, %s3422_s3 }
 0x261   :  { %p2093_p1 = pnand %p2091_p0, %p2088_p13 }
 0x263   :  { %2096 = shalt.err (!%p2093_p1)
}
 0x264   :  { %s2109_s17 = smov 128   ;;  %s2110_s18 = smov 8  }
 0x265   :  { %1838 = dma.vmem_to_hbm [thread:$0]  %s1833_s8, 2048, %s3422_s3, [#allocation4], %s2109_s17, %s2109_s17, %s2110_s18  }
 0x266   :  { %2099 = dma.done.wait [#allocation4], 2048  }
 0x267   :  { %2100 = vsyncadd [#allocation4], 4294965248 }
 0x268   :  { %1842 = vsyncpa [#allocation3], 1 }
 0x269   :  { %1843 = vsyncpa [#allocation4], 1 }

</bundles_post_ra>
